<compile_context>
chip_gen: v5e
topology: v5e:2x2
jax: 0.10.0
libtpu: 0.0.40
codegen_flags: <defaults>
</compile_context>

<pallas_src>
import functools
import math

import jax
import jax.numpy as jnp
from jax.experimental import pallas as pl
from jax.experimental.pallas import tpu as pltpu

LN_EPS = 1e-5  # nn.LayerNorm default


# ---------------------------------------------------------------------------
# Generation-aware sizing helpers
# ---------------------------------------------------------------------------
def _tpu_vmem_capacity_bytes():
    """Physical per-core VMEM in bytes, or None if it cannot be queried."""
    try:
        info = pltpu.get_tpu_info()
    except Exception:
        return None
    for attr in ("vmem_capacity_bytes", "vmem_bytes", "vmem_size_bytes"):
        v = getattr(info, attr, None)
        if v:
            return int(v)
    return None


def _vmem_limit_bytes(cap):
    if cap is None:
        return 64 * 1024 * 1024                       # proven-safe default
    # Leave headroom for Mosaic internal scratch:
    #   v7x (64 MiB physical)  -> 48 MiB limit
    #   v5e/v6e (128 MiB)      -> 96 MiB limit
    return min(cap * 3 // 4, 100 * 1024 * 1024)


def _pick_tiles(seq_len, num_heads, *, small_vmem, score_budget_bytes):
    """Pick (q_tile, head_chunk) so the (head_chunk, q_tile, L) f32 score block
    stays within `score_budget_bytes`."""
    candidates = (256, 128) if small_vmem else (512, 256, 128)
    q_tile = seq_len
    for t in candidates:
        if seq_len % t == 0:
            q_tile = t
            break
    # Shrink the q tile while even a single head's score block overflows.
    while q_tile > 128 and q_tile % 2 == 0 and q_tile * seq_len * 4 > score_budget_bytes:
        q_tile //= 2
    # Largest divisor of num_heads whose score block fits the budget.
    head_chunk = num_heads
    while head_chunk > 1 and head_chunk * q_tile * seq_len * 4 > score_budget_bytes:
        head_chunk -= 1
        while num_heads % head_chunk:
            head_chunk -= 1
    return q_tile, head_chunk


# ---------------------------------------------------------------------------
# Kernel
# ---------------------------------------------------------------------------
def _mhsa_kernel(x_ref, g_ref, b_ref,
                 wq_ref, bq_ref, wk_ref, bk_ref, wv_ref, bv_ref,
                 wo_ref, bo_ref,
                 o_ref,
                 xn_s, k_s, v_s, *,
                 num_heads: int, head_dim: int, q_tile: int, head_chunk: int,
                 approx_recip: bool):
    H, D, Hc = num_heads, head_dim, head_chunk
    E = H * D
    qi = pl.program_id(1)

    # ---- once per batch element: LayerNorm + K/V projection into scratch ----
    @pl.when(qi == 0)
    def _project_kv():
        x = x_ref[...]                                    # (L, E) f32
        L = x.shape[0]
        mean = jnp.mean(x, axis=-1, keepdims=True)
        cen = x - mean
        var = jnp.mean(cen * cen, axis=-1, keepdims=True)
        xn = cen * jax.lax.rsqrt(var + LN_EPS)
        xn = xn * g_ref[...] + b_ref[...]                 # affine, f32
        xn_c = xn.astype(xn_s.dtype)                      # cast once, up front
        xn_s[...] = xn_c                                  # persists for Q tiles

        def to_heads(t):                                  # (L, E) -> (H, L, D)
            return jnp.transpose(t.reshape(L, H, D), (1, 0, 2))

        # K then V: one (L, E) f32 accumulator live at a time; cast BEFORE the
        # head-major transpose and scratch store.
        k = jnp.dot(xn_c, wk_ref[...],
                    preferred_element_type=jnp.float32) + bk_ref[...]
        k_s[...] = to_heads(k.astype(k_s.dtype))
        v = jnp.dot(xn_c, wv_ref[...],
                    preferred_element_type=jnp.float32) + bv_ref[...]
        v_s[...] = to_heads(v.astype(v_s.dtype))

    # ---- per query tile: Q projection + attention + output projection ----
    q_start = pl.multiple_of(qi * q_tile, q_tile)
    xn_t = xn_s[pl.ds(q_start, q_tile), :]                # (TQ, E) compute dtype
    # Wq / bq were pre-scaled by 1/sqrt(D) in the wrapper.
    q2d = (jnp.dot(xn_t, wq_ref[...], preferred_element_type=jnp.float32)
           + bq_ref[...]).astype(xn_t.dtype)              # (TQ, E)

    out_acc = jnp.zeros((q_tile, E), jnp.float32)
    n_groups = H // Hc
    for g in range(n_groups):                             # small static loop
        hs = g * Hc
        # (TQ, Hc*D) -> (Hc, TQ, D)
        qg = jnp.transpose(q2d[:, hs * D:(hs + Hc) * D].reshape(q_tile, Hc, D),
                           (1, 0, 2))
        kg = k_s[pl.ds(hs, Hc), :, :]                     # (Hc, L, D)
        vg = v_s[pl.ds(hs, Hc), :, :]                     # (Hc, L, D)

        # scores: contract head_dim directly (no materialized k.T)
        s = jax.lax.dot_general(qg, kg, (((2,), (2,)), ((0,), (0,))),
                                preferred_element_type=jnp.float32)  # (Hc,TQ,L)
        m = jnp.max(s, axis=-1, keepdims=True)
        p = jnp.exp(s - m)                                # unnormalized, <= 1
        denom = jnp.sum(p, axis=-1, keepdims=True)        # (Hc, TQ, 1) f32

        pv = jax.lax.dot_general(p.astype(vg.dtype), vg,
                                 (((2,), (1,)), ((0,), (0,))),
                                 preferred_element_type=jnp.float32)  # (Hc,TQ,D)
        # deferred softmax normalization on the small (Hc, TQ, D) accumulator
        if approx_recip:
            pv = pv * pl.reciprocal(denom, approx=True)
        else:
            pv = pv / denom

        # output projection, split along K over head groups: K = Hc*D per pass
        a2d = jnp.transpose(pv, (1, 0, 2)).reshape(q_tile, Hc * D)
        a2d = a2d.astype(wo_ref.dtype)
        out_acc = out_acc + jnp.dot(a2d, wo_ref[pl.ds(hs * D, Hc * D), :],
                                    preferred_element_type=jnp.float32)

    o_ref[...] = (out_acc + bo_ref[...]).astype(o_ref.dtype)


# ---------------------------------------------------------------------------
# Wrapper
# ---------------------------------------------------------------------------
def multihead_self_attention(x, params, *, num_heads: int,
                             compute_dtype=jnp.bfloat16, out_dtype=jnp.float32,
                             q_tile=None, head_chunk=None):
    """x: (L, N, E) float32 -> (L, N, E) out_dtype (PyTorch batch_first=False)."""
    L, N, E = x.shape
    assert E % num_heads == 0
    D = E // num_heads

    cap = _tpu_vmem_capacity_bytes()
    vmem_limit = _vmem_limit_bytes(cap)
    small_vmem = cap is not None and cap <= 64 * 1024 * 1024
    score_budget = max(vmem_limit // 6, 2 * 1024 * 1024)

    auto_qt, auto_hc = _pick_tiles(L, num_heads, small_vmem=small_vmem,
                                   score_budget_bytes=score_budget)
    q_tile = auto_qt if q_tile is None else q_tile
    head_chunk = auto_hc if head_chunk is None else head_chunk
    assert L % q_tile == 0
    assert num_heads % head_chunk == 0
    n_qt = L // q_tile

    f32 = jnp.float32
    scale = 1.0 / math.sqrt(float(D))

    gamma = params["ln_gamma"].reshape(1, E).astype(f32)
    beta = params["ln_beta"].reshape(1, E).astype(f32)
    w_qkv = params["w_qkv"]                               # (E, 3E) == in_proj_weight.T
    b_qkv = params["b_qkv"]                               # (3E,)
    # 1/sqrt(D) folded into the query weights (one-time parameter transform).
    wq = (w_qkv[:, 0 * E:1 * E] * scale).astype(compute_dtype)
    bq = (b_qkv[0 * E:1 * E] * scale).reshape(1, E).astype(f32)
    wk = w_qkv[:, 1 * E:2 * E].astype(compute_dtype)
    bk = b_qkv[1 * E:2 * E].reshape(1, E).astype(f32)
    wv = w_qkv[:, 2 * E:3 * E].astype(compute_dtype)
    bv = b_qkv[2 * E:3 * E].reshape(1, E).astype(f32)
    wo = params["w_out"].astype(compute_dtype)            # (E, E), kept whole
    bo = params["b_out"].reshape(1, E).astype(f32)

    # Free reshape: keeps the PyTorch (L, N, E) layout in HBM (no transposes)
    # while the BlockSpec pulls one batch element as a strided (L, E) slab.
    x4 = x.reshape(L, N, 1, E)

    kernel = functools.partial(
        _mhsa_kernel, num_heads=num_heads, head_dim=D, q_tile=q_tile,
        head_chunk=head_chunk, approx_recip=(compute_dtype != jnp.float32))

    const = lambda b, q: (0, 0)
    out4 = pl.pallas_call(
        kernel,
        out_shape=jax.ShapeDtypeStruct((L, N, 1, E), out_dtype),
        grid_spec=pltpu.PrefetchScalarGridSpec(
            num_scalar_prefetch=0,
            grid=(N, n_qt),                               # (batch, query tiles)
            in_specs=[
                pl.BlockSpec((L, None, None, E), lambda b, q: (0, b, 0, 0)),  # x
                pl.BlockSpec((1, E), const),              # ln gamma
                pl.BlockSpec((1, E), const),              # ln beta
                pl.BlockSpec((E, E), const),              # Wq (pre-scaled)
                pl.BlockSpec((1, E), const),              # bq (pre-scaled)
                pl.BlockSpec((E, E), const),              # Wk
                pl.BlockSpec((1, E), const),              # bk
                pl.BlockSpec((E, E), const),              # Wv
                pl.BlockSpec((1, E), const),              # bv
                pl.BlockSpec((E, E), const),              # Wo (whole, K = E)
                pl.BlockSpec((1, E), const),              # bo
            ],
            out_specs=pl.BlockSpec((q_tile, None, None, E),
                                   lambda b, q: (q, b, 0, 0)),
            scratch_shapes=[
                pltpu.VMEM((L, E), compute_dtype),            # xn (post-LN)
                pltpu.VMEM((num_heads, L, D), compute_dtype),  # K (head-major)
                pltpu.VMEM((num_heads, L, D), compute_dtype),  # V (head-major)
            ],
        ),
        compiler_params=pltpu.CompilerParams(
            dimension_semantics=("parallel", "arbitrary"),
            vmem_limit_bytes=vmem_limit,
        ),
    )(x4, gamma, beta, wq, bq, wk, bk, wv, bv, wo, bo)

    return out4.reshape(L, N, E)


# ---------------------------------------------------------------------------
# Pure-JAX reference (PyTorch semantics, f32)
# ---------------------------------------------------------------------------
def _reference(x, params, *, num_heads: int):
    L, N, E = x.shape
    D = E // num_heads
    mean = jnp.mean(x, axis=-1, keepdims=True)
    var = jnp.mean((x - mean) ** 2, axis=-1, keepdims=True)
    xn = (x - mean) / jnp.sqrt(var + LN_EPS)
    xn = xn * params["ln_gamma"] + params["ln_beta"]

    qkv = xn @ params["w_qkv"] + params["b_qkv"]          # (L, N, 3E)
    q, k, v = jnp.split(qkv, 3, axis=-1)

    def heads(t):  # (L, N, E) -> (N, H, L, D)
        return jnp.transpose(t.reshape(L, N, num_heads, D), (1, 2, 0, 3))

    qh, kh, vh = heads(q), heads(k), heads(v)
    s = jnp.einsum("nhld,nhmd->nhlm", qh, kh) / jnp.sqrt(jnp.float32(D))
    p = jax.nn.softmax(s, axis=-1)
    o = jnp.einsum("nhlm,nhmd->nhld", p, vh)              # (N, H, L, D)
    o = jnp.transpose(o, (2, 0, 1, 3)).reshape(L, N, E)
    return o @ params["w_out"] + params["b_out"]


if __name__ == "__main__":
    # Small shapes consistent with the module: embed_dim=32, num_heads=4,
    # seq_len=8, batch=2.  attn_dropout=0 (default) -> no dropout at inference.
    L, N, E, H = 8, 2, 32, 4

    key = jax.random.PRNGKey(0)
    ks = jax.random.split(key, 6)
    params = {
        "ln_gamma": jnp.ones((E,), jnp.float32),
        "ln_beta": jnp.zeros((E,), jnp.float32),
        "w_qkv": 0.05 * jax.random.normal(ks[0], (E, 3 * E), jnp.float32),
        "b_qkv": 0.01 * jax.random.normal(ks[1], (3 * E,), jnp.float32),
        "w_out": 0.05 * jax.random.normal(ks[2], (E, E), jnp.float32),
        "b_out": 0.01 * jax.random.normal(ks[3], (E,), jnp.float32),
    }
    x = jax.random.normal(ks[4], (L, N, E), jnp.float32)

    ref = _reference(x, params, num_heads=H)

    # Exact path: f32 weights/scratch + exact softmax divide -> strict check.
    out_f32 = jax.block_until_ready(
        multihead_self_attention(x, params, num_heads=H,
                                 compute_dtype=jnp.float32))
    assert out_f32.shape == (L, N, E)
    assert jnp.allclose(out_f32, ref, atol=1e-4, rtol=1e-4), "f32 mismatch vs reference"

    # Default fast path: bf16 weights/scratch + approx reciprocal -> loose check.
    out_bf16 = jax.block_until_ready(
        multihead_self_attention(x, params, num_heads=H))
    assert out_bf16.shape == (L, N, E)
    assert jnp.allclose(out_bf16, ref, atol=5e-2, rtol=5e-2), "bf16 mismatch vs reference"

    print("KERNEL_OK")
</pallas_src>

<mosaic_0001>
module attributes {stable_mosaic.version = 11 : i64} {
  func.func @_mhsa_kernel(%arg0: i32, %arg1: i32, %arg2: memref<8x1x1x32xf32, #tpu.memory_space<vmem>>, %arg3: memref<1x32xf32, #tpu.memory_space<vmem>>, %arg4: memref<1x32xf32, #tpu.memory_space<vmem>>, %arg5: memref<32x32xf32, #tpu.memory_space<vmem>>, %arg6: memref<1x32xf32, #tpu.memory_space<vmem>>, %arg7: memref<32x32xf32, #tpu.memory_space<vmem>>, %arg8: memref<1x32xf32, #tpu.memory_space<vmem>>, %arg9: memref<32x32xf32, #tpu.memory_space<vmem>>, %arg10: memref<1x32xf32, #tpu.memory_space<vmem>>, %arg11: memref<32x32xf32, #tpu.memory_space<vmem>>, %arg12: memref<1x32xf32, #tpu.memory_space<vmem>>, %arg13: memref<8x1x1x32xf32, #tpu.memory_space<vmem>>, %arg14: memref<8x32xf32, #tpu.memory_space<vmem>>, %arg15: memref<4x8x8xf32, #tpu.memory_space<vmem>>, %arg16: memref<4x8x8xf32, #tpu.memory_space<vmem>>) attributes {dimension_semantics = [#tpu.dimension_semantics<parallel>, #tpu.dimension_semantics<arbitrary>], iteration_bounds = array<i64: 2, 1>, scalar_prefetch = 0 : i64, scratch_operands = 3 : i64, tpu.core_type = #tpu.core_type<tc>, window_params = [{transform_indices = @transform_0, window_bounds = array<i64: 8, 1, 1, 32>}, {pipeline_mode = #tpu.pipeline_mode<synchronous>, transform_indices = @transform_1, window_bounds = array<i64: 1, 32>}, {pipeline_mode = #tpu.pipeline_mode<synchronous>, transform_indices = @transform_2, window_bounds = array<i64: 1, 32>}, {pipeline_mode = #tpu.pipeline_mode<synchronous>, transform_indices = @transform_3, window_bounds = array<i64: 32, 32>}, {pipeline_mode = #tpu.pipeline_mode<synchronous>, transform_indices = @transform_4, window_bounds = array<i64: 1, 32>}, {pipeline_mode = #tpu.pipeline_mode<synchronous>, transform_indices = @transform_5, window_bounds = array<i64: 32, 32>}, {pipeline_mode = #tpu.pipeline_mode<synchronous>, transform_indices = @transform_6, window_bounds = array<i64: 1, 32>}, {pipeline_mode = #tpu.pipeline_mode<synchronous>, transform_indices = @transform_7, window_bounds = array<i64: 32, 32>}, {pipeline_mode = #tpu.pipeline_mode<synchronous>, transform_indices = @transform_8, window_bounds = array<i64: 1, 32>}, {pipeline_mode = #tpu.pipeline_mode<synchronous>, transform_indices = @transform_9, window_bounds = array<i64: 32, 32>}, {pipeline_mode = #tpu.pipeline_mode<synchronous>, transform_indices = @transform_10, window_bounds = array<i64: 1, 32>}, {transform_indices = @transform_11, window_bounds = array<i64: 8, 1, 1, 32>}]} {
    %c0_i32 = arith.constant 0 : i32
    %0 = arith.cmpi eq, %arg1, %c0_i32 : i32
    %1 = arith.extui %0 : i1 to i32
    %c0_i32_0 = arith.constant 0 : i32
    %2 = arith.cmpi ne, %1, %c0_i32_0 : i32
    scf.if %2 {
      %c0_25 = arith.constant 0 : index
      %c0_26 = arith.constant 0 : index
      %c0_27 = arith.constant 0 : index
      %c0_28 = arith.constant 0 : index
      %39 = vector.load %arg2[%c0_25, %c0_26, %c0_27, %c0_28] : memref<8x1x1x32xf32, #tpu.memory_space<vmem>>, vector<8x1x1x32xf32>
      %40 = vector.shape_cast %39 : vector<8x1x1x32xf32> to vector<8x32xf32>
      %cst_29 = arith.constant dense<0.000000e+00> : vector<8xf32>
      %41 = vector.multi_reduction <add>, %40, %cst_29 [1] : vector<8x32xf32> to vector<8xf32>
      %42 = vector.shape_cast %41 : vector<8xf32> to vector<8x1xf32>
      %cst_30 = arith.constant 3.200000e+01 : f32
      %43 = vector.broadcast %cst_30 : f32 to vector<8x1xf32>
      %44 = arith.divf %42, %43 : vector<8x1xf32>
      %45 = vector.broadcast %44 : vector<8x1xf32> to vector<8x32xf32>
      %46 = arith.subf %40, %45 : vector<8x32xf32>
      %47 = arith.mulf %46, %46 : vector<8x32xf32>
      %cst_31 = arith.constant dense<0.000000e+00> : vector<8xf32>
      %48 = vector.multi_reduction <add>, %47, %cst_31 [1] : vector<8x32xf32> to vector<8xf32>
      %49 = vector.shape_cast %48 : vector<8xf32> to vector<8x1xf32>
      %cst_32 = arith.constant 3.200000e+01 : f32
      %50 = vector.broadcast %cst_32 : f32 to vector<8x1xf32>
      %51 = arith.divf %49, %50 : vector<8x1xf32>
      %cst_33 = arith.constant 9.99999974E-6 : f32
      %52 = vector.broadcast %cst_33 : f32 to vector<8x1xf32>
      %53 = arith.addf %51, %52 : vector<8x1xf32>
      %54 = math.rsqrt %53 : vector<8x1xf32>
      %55 = vector.broadcast %54 : vector<8x1xf32> to vector<8x32xf32>
      %56 = arith.mulf %46, %55 : vector<8x32xf32>
      %c0_34 = arith.constant 0 : index
      %c0_35 = arith.constant 0 : index
      %57 = vector.load %arg3[%c0_34, %c0_35] : memref<1x32xf32, #tpu.memory_space<vmem>>, vector<1x32xf32>
      %58 = vector.broadcast %57 : vector<1x32xf32> to vector<8x32xf32>
      %59 = arith.mulf %56, %58 : vector<8x32xf32>
      %c0_36 = arith.constant 0 : index
      %c0_37 = arith.constant 0 : index
      %60 = vector.load %arg4[%c0_36, %c0_37] : memref<1x32xf32, #tpu.memory_space<vmem>>, vector<1x32xf32>
      %61 = vector.broadcast %60 : vector<1x32xf32> to vector<8x32xf32>
      %62 = arith.addf %59, %61 : vector<8x32xf32>
      %c0_38 = arith.constant 0 : index
      %c0_39 = arith.constant 0 : index
      %63 = vector.load %arg14[%c0_38, %c0_39] : memref<8x32xf32, #tpu.memory_space<vmem>>, vector<8x32xf32>
      tpu.vector_store %arg14[%c0_38, %c0_39], %62 {strides = array<i32>} : memref<8x32xf32, #tpu.memory_space<vmem>>, vector<8x32xf32>,
      %c0_40 = arith.constant 0 : index
      %c0_41 = arith.constant 0 : index
      %64 = vector.load %arg7[%c0_40, %c0_41] : memref<32x32xf32, #tpu.memory_space<vmem>>, vector<32x32xf32>
      %cst_42 = arith.constant dense<0.000000e+00> : vector<8x32xf32>
      %65 = tpu.matmul %62, %64, %cst_42 {dimension_numbers = #tpu.dot_dimension_numbers<[1], [0], [0], [1], [0, 0, 1, 1], [], []>} : vector<8x32xf32>, vector<32x32xf32>, vector<8x32xf32> -> vector<8x32xf32>
      %c0_43 = arith.constant 0 : index
      %c0_44 = arith.constant 0 : index
      %66 = vector.load %arg8[%c0_43, %c0_44] : memref<1x32xf32, #tpu.memory_space<vmem>>, vector<1x32xf32>
      %67 = vector.broadcast %66 : vector<1x32xf32> to vector<8x32xf32>
      %68 = arith.addf %65, %67 : vector<8x32xf32>
      %69 = vector.shape_cast %68 : vector<8x32xf32> to vector<8x4x8xf32>
      %70 = tpu.transpose %69, [1, 0, 2] : vector<8x4x8xf32> -> vector<4x8x8xf32>
      %c0_45 = arith.constant 0 : index
      %c0_46 = arith.constant 0 : index
      %c0_47 = arith.constant 0 : index
      %71 = vector.load %arg15[%c0_45, %c0_46, %c0_47] : memref<4x8x8xf32, #tpu.memory_space<vmem>>, vector<4x8x8xf32>
      tpu.vector_store %arg15[%c0_45, %c0_46, %c0_47], %70 {strides = array<i32>} : memref<4x8x8xf32, #tpu.memory_space<vmem>>, vector<4x8x8xf32>,
      %c0_48 = arith.constant 0 : index
      %c0_49 = arith.constant 0 : index
      %72 = vector.load %arg9[%c0_48, %c0_49] : memref<32x32xf32, #tpu.memory_space<vmem>>, vector<32x32xf32>
      %cst_50 = arith.constant dense<0.000000e+00> : vector<8x32xf32>
      %73 = tpu.matmul %62, %72, %cst_50 {dimension_numbers = #tpu.dot_dimension_numbers<[1], [0], [0], [1], [0, 0, 1, 1], [], []>} : vector<8x32xf32>, vector<32x32xf32>, vector<8x32xf32> -> vector<8x32xf32>
      %c0_51 = arith.constant 0 : index
      %c0_52 = arith.constant 0 : index
      %74 = vector.load %arg10[%c0_51, %c0_52] : memref<1x32xf32, #tpu.memory_space<vmem>>, vector<1x32xf32>
      %75 = vector.broadcast %74 : vector<1x32xf32> to vector<8x32xf32>
      %76 = arith.addf %73, %75 : vector<8x32xf32>
      %77 = vector.shape_cast %76 : vector<8x32xf32> to vector<8x4x8xf32>
      %78 = tpu.transpose %77, [1, 0, 2] : vector<8x4x8xf32> -> vector<4x8x8xf32>
      %c0_53 = arith.constant 0 : index
      %c0_54 = arith.constant 0 : index
      %c0_55 = arith.constant 0 : index
      %79 = vector.load %arg16[%c0_53, %c0_54, %c0_55] : memref<4x8x8xf32, #tpu.memory_space<vmem>>, vector<4x8x8xf32>
      tpu.vector_store %arg16[%c0_53, %c0_54, %c0_55], %78 {strides = array<i32>} : memref<4x8x8xf32, #tpu.memory_space<vmem>>, vector<4x8x8xf32>,
    } else {
    }
    %c8_i32 = arith.constant 8 : i32
    %3 = arith.muli %arg1, %c8_i32 : i32
    %4 = tpu.assume_multiple %3, 8 : i32
    %5 = arith.index_cast %4 : i32 to index
    %c0 = arith.constant 0 : index
    %6 = vector.load %arg14[%5, %c0] : memref<8x32xf32, #tpu.memory_space<vmem>>, vector<8x32xf32>
    %c0_1 = arith.constant 0 : index
    %c0_2 = arith.constant 0 : index
    %7 = vector.load %arg5[%c0_1, %c0_2] : memref<32x32xf32, #tpu.memory_space<vmem>>, vector<32x32xf32>
    %cst = arith.constant dense<0.000000e+00> : vector<8x32xf32>
    %8 = tpu.matmul %6, %7, %cst {dimension_numbers = #tpu.dot_dimension_numbers<[1], [0], [0], [1], [0, 0, 1, 1], [], []>} : vector<8x32xf32>, vector<32x32xf32>, vector<8x32xf32> -> vector<8x32xf32>
    %c0_3 = arith.constant 0 : index
    %c0_4 = arith.constant 0 : index
    %9 = vector.load %arg6[%c0_3, %c0_4] : memref<1x32xf32, #tpu.memory_space<vmem>>, vector<1x32xf32>
    %10 = vector.broadcast %9 : vector<1x32xf32> to vector<8x32xf32>
    %11 = arith.addf %8, %10 : vector<8x32xf32>
    %cst_5 = arith.constant 0.000000e+00 : f32
    %12 = vector.broadcast %cst_5 : f32 to vector<8x32xf32>
    %13 = vector.shape_cast %11 : vector<8x32xf32> to vector<8x4x8xf32>
    %14 = tpu.transpose %13, [1, 0, 2] : vector<8x4x8xf32> -> vector<4x8x8xf32>
    %c0_6 = arith.constant 0 : index
    %c0_7 = arith.constant 0 : index
    %c0_8 = arith.constant 0 : index
    %15 = vector.load %arg15[%c0_6, %c0_7, %c0_8] : memref<4x8x8xf32, #tpu.memory_space<vmem>>, vector<4x8x8xf32>
    %c0_9 = arith.constant 0 : index
    %c0_10 = arith.constant 0 : index
    %c0_11 = arith.constant 0 : index
    %16 = vector.load %arg16[%c0_9, %c0_10, %c0_11] : memref<4x8x8xf32, #tpu.memory_space<vmem>>, vector<4x8x8xf32>
    %cst_12 = arith.constant dense<0.000000e+00> : vector<4x8x8xf32>
    %17 = tpu.matmul %14, %15, %cst_12 {dimension_numbers = #tpu.dot_dimension_numbers<[2], [2], [1], [1], [0, 0, 0, 1, 1, 1], [0], [0]>} : vector<4x8x8xf32>, vector<4x8x8xf32>, vector<4x8x8xf32> -> vector<4x8x8xf32>
    %cst_13 = arith.constant dense<0xFF800000> : vector<4x8xf32>
    %18 = vector.multi_reduction <maximumf>, %17, %cst_13 [2] : vector<4x8x8xf32> to vector<4x8xf32>
    %19 = vector.shape_cast %18 : vector<4x8xf32> to vector<4x8x1xf32>
    %20 = vector.broadcast %19 : vector<4x8x1xf32> to vector<4x8x8xf32>
    %21 = arith.subf %17, %20 : vector<4x8x8xf32>
    %22 = math.exp %21 : vector<4x8x8xf32>
    %cst_14 = arith.constant dense<0.000000e+00> : vector<4x8xf32>
    %23 = vector.multi_reduction <add>, %22, %cst_14 [2] : vector<4x8x8xf32> to vector<4x8xf32>
    %24 = vector.shape_cast %23 : vector<4x8xf32> to vector<4x8x1xf32>
    %cst_15 = arith.constant dense<0.000000e+00> : vector<4x8x8xf32>
    %25 = tpu.matmul %22, %16, %cst_15 {dimension_numbers = #tpu.dot_dimension_numbers<[2], [1], [1], [2], [0, 0, 0, 1, 1, 2], [0], [0]>} : vector<4x8x8xf32>, vector<4x8x8xf32>, vector<4x8x8xf32> -> vector<4x8x8xf32>
    %26 = vector.broadcast %24 : vector<4x8x1xf32> to vector<4x8x8xf32>
    %27 = arith.divf %25, %26 : vector<4x8x8xf32>
    %28 = tpu.transpose %27, [1, 0, 2] : vector<4x8x8xf32> -> vector<8x4x8xf32>
    %29 = vector.shape_cast %28 : vector<8x4x8xf32> to vector<8x32xf32>
    %c0_16 = arith.constant 0 : index
    %c0_17 = arith.constant 0 : index
    %30 = vector.load %arg11[%c0_16, %c0_17] : memref<32x32xf32, #tpu.memory_space<vmem>>, vector<32x32xf32>
    %cst_18 = arith.constant dense<0.000000e+00> : vector<8x32xf32>
    %31 = tpu.matmul %29, %30, %cst_18 {dimension_numbers = #tpu.dot_dimension_numbers<[1], [0], [0], [1], [0, 0, 1, 1], [], []>} : vector<8x32xf32>, vector<32x32xf32>, vector<8x32xf32> -> vector<8x32xf32>
    %32 = arith.addf %12, %31 : vector<8x32xf32>
    %c0_19 = arith.constant 0 : index
    %c0_20 = arith.constant 0 : index
    %33 = vector.load %arg12[%c0_19, %c0_20] : memref<1x32xf32, #tpu.memory_space<vmem>>, vector<1x32xf32>
    %34 = vector.broadcast %33 : vector<1x32xf32> to vector<8x32xf32>
    %35 = arith.addf %32, %34 : vector<8x32xf32>
    %c0_21 = arith.constant 0 : index
    %c0_22 = arith.constant 0 : index
    %c0_23 = arith.constant 0 : index
    %c0_24 = arith.constant 0 : index
    %36 = vector.load %arg13[%c0_21, %c0_22, %c0_23, %c0_24] : memref<8x1x1x32xf32, #tpu.memory_space<vmem>>, vector<8x1x1x32xf32>
    %37 = vector.shape_cast %36 : vector<8x1x1x32xf32> to vector<8x32xf32>
    %38 = vector.shape_cast %35 : vector<8x32xf32> to vector<8x1x1x32xf32>
    tpu.vector_store %arg13[%c0_21, %c0_22, %c0_23, %c0_24], %38 {strides = array<i32>} : memref<8x1x1x32xf32, #tpu.memory_space<vmem>>, vector<8x1x1x32xf32>,
    return
  }
  func.func @transform_0(%arg0: i32, %arg1: i32) -> (i32, i32, i32, i32) {
    %c0_i32 = arith.constant 0 : i32
    %c0_i32_0 = arith.constant 0 : i32
    %c0_i32_1 = arith.constant 0 : i32
    %c0_i32_2 = arith.constant 0 : i32
    return %c0_i32, %arg0, %c0_i32_0, %c0_i32_1 : i32, i32, i32, i32
  }
  func.func @transform_1(%arg0: i32, %arg1: i32) -> (i32, i32) {
    %c0_i32 = arith.constant 0 : i32
    %c0_i32_0 = arith.constant 0 : i32
    %c0_i32_1 = arith.constant 0 : i32
    return %c0_i32, %c0_i32_0 : i32, i32
  }
  func.func @transform_2(%arg0: i32, %arg1: i32) -> (i32, i32) {
    %c0_i32 = arith.constant 0 : i32
    %c0_i32_0 = arith.constant 0 : i32
    %c0_i32_1 = arith.constant 0 : i32
    return %c0_i32, %c0_i32_0 : i32, i32
  }
  func.func @transform_3(%arg0: i32, %arg1: i32) -> (i32, i32) {
    %c0_i32 = arith.constant 0 : i32
    %c0_i32_0 = arith.constant 0 : i32
    %c0_i32_1 = arith.constant 0 : i32
    return %c0_i32, %c0_i32_0 : i32, i32
  }
  func.func @transform_4(%arg0: i32, %arg1: i32) -> (i32, i32) {
    %c0_i32 = arith.constant 0 : i32
    %c0_i32_0 = arith.constant 0 : i32
    %c0_i32_1 = arith.constant 0 : i32
    return %c0_i32, %c0_i32_0 : i32, i32
  }
  func.func @transform_5(%arg0: i32, %arg1: i32) -> (i32, i32) {
    %c0_i32 = arith.constant 0 : i32
    %c0_i32_0 = arith.constant 0 : i32
    %c0_i32_1 = arith.constant 0 : i32
    return %c0_i32, %c0_i32_0 : i32, i32
  }
  func.func @transform_6(%arg0: i32, %arg1: i32) -> (i32, i32) {
    %c0_i32 = arith.constant 0 : i32
    %c0_i32_0 = arith.constant 0 : i32
    %c0_i32_1 = arith.constant 0 : i32
    return %c0_i32, %c0_i32_0 : i32, i32
  }
  func.func @transform_7(%arg0: i32, %arg1: i32) -> (i32, i32) {
    %c0_i32 = arith.constant 0 : i32
    %c0_i32_0 = arith.constant 0 : i32
    %c0_i32_1 = arith.constant 0 : i32
    return %c0_i32, %c0_i32_0 : i32, i32
  }
  func.func @transform_8(%arg0: i32, %arg1: i32) -> (i32, i32) {
    %c0_i32 = arith.constant 0 : i32
    %c0_i32_0 = arith.constant 0 : i32
    %c0_i32_1 = arith.constant 0 : i32
    return %c0_i32, %c0_i32_0 : i32, i32
  }
  func.func @transform_9(%arg0: i32, %arg1: i32) -> (i32, i32) {
    %c0_i32 = arith.constant 0 : i32
    %c0_i32_0 = arith.constant 0 : i32
    %c0_i32_1 = arith.constant 0 : i32
    return %c0_i32, %c0_i32_0 : i32, i32
  }
  func.func @transform_10(%arg0: i32, %arg1: i32) -> (i32, i32) {
    %c0_i32 = arith.constant 0 : i32
    %c0_i32_0 = arith.constant 0 : i32
    %c0_i32_1 = arith.constant 0 : i32
    return %c0_i32, %c0_i32_0 : i32, i32
  }
  func.func @transform_11(%arg0: i32, %arg1: i32) -> (i32, i32, i32, i32) {
    %c0_i32 = arith.constant 0 : i32
    %c0_i32_0 = arith.constant 0 : i32
    %c0_i32_1 = arith.constant 0 : i32
    return %arg1, %arg0, %c0_i32, %c0_i32_0 : i32, i32, i32, i32
  }
}

</mosaic_0001>

<bundles_post_ra>
// kernel: tpu_custom_call.1
= control target key start
LH: loop header
LB: loop body
LE: loop exit
PB: predicated region body
PF: predicated region fallthrough
CT: control target
= control target key end

     0   :  { %s2904_s0 = inlined_call_operand.hbm [shape: f32[8,2,1,32], index: 0, kind: input, shape index: {}]   ;;  %s2905_s1 = inlined_call_operand.hbm [shape: f32[1,32], index: 1, kind: input, shape index: {}]   ;;  %s2906_s2 = inlined_call_operand.vmem [shape: f32[1,32], index: 2, kind: input, shape index: {}]   ;;  %s2907_s3 = inlined_call_operand.hbm [shape: f32[32,32], index: 3, kind: input, shape index: {}]   ;;  %s2908_s4 = inlined_call_operand.vmem [shape: f32[1,32], index: 4, kind: input, shape index: {}]   ;;  %s2909_s5 = inlined_call_operand.hbm [shape: f32[32,32], index: 5, kind: input, shape index: {}]   ;;  %s2910_s6 = inlined_call_operand.vmem [shape: f32[1,32], index: 6, kind: input, shape index: {}]   ;;  %s2911_s7 = inlined_call_operand.hbm [shape: f32[32,32], index: 7, kind: input, shape index: {}]   ;;  %s2912_s8 = inlined_call_operand.vmem [shape: f32[1,32], index: 8, kind: input, shape index: {}]   ;;  %s2913_s9 = inlined_call_operand.hbm [shape: f32[32,32], index: 9, kind: input, shape index: {}]   ;;  %s2914_s10 = inlined_call_operand.vmem [shape: f32[1,32], index: 10, kind: input, shape index: {}]   ;;  %s2915_s11 = inlined_call_operand.hbm [shape: f32[8,2,1,32], index: 11, kind: output, shape index: {}]  }
   0x1   :  { %2919 = sst [smem:[#allocation24_spill]] %s2905_s1 }
   0x2   :  { %2920 = sst [smem:[#allocation25_spill]] %s2907_s3 }
   0x3   :  { %2921 = sst [smem:[#allocation26_spill]] %s2909_s5 }
   0x4   :  { %2922 = sst [smem:[#allocation27_spill]] %s2911_s7 }
   0x5   :  { %2923 = sst [smem:[#allocation28_spill]] %s2913_s9 }
   0x6   :  { %2924 = sst [smem:[#allocation29_spill]] %s2914_s10 }
   0x7   :  { %2925 = sst [smem:[#allocation30_spill]] %s2915_s11 }
   0x8   :  { %16 = vsyncpa [#allocation6], 0 }
   0x9   :  { %18 = vsyncpa [#allocation6 + $0x1], 0 }
   0xa   :  { %19 = vsyncpa [#allocation9], 0 }
   0xb   :  { %20 = vsyncpa [#allocation12], 0 }
   0xc   :  { %21 = vsyncpa [#allocation15], 0 }
   0xd   :  { %22 = vsyncpa [#allocation7], 0 }
   0xe   :  { %24 = vsyncpa [#allocation7 + $0x1], 0  ;;  %s2404_s17 = smov 0   ;;  %s2406_s18 = smov 0  }
   0xf   :  { %s2408_s19 = smov 0   ;;  %s2410_s20 = smov 0  }
  0x10   :  { %s2412_s21 = smov 0   ;;  %s2414_s22 = smov 0  }
  0x11 LB: > { %2926 = sst [smem:[#allocation22_spill]] %s2301_s17  ;;  %s1855_s23 = sadd.s32 4294967295, %s2321_s22   ;;  %s2321_s22 = sphi %s2414_s22, %s30_s22   ;;  %s2317_s21 = sphi %s2412_s21, %s2950_s21   ;;  %s2313_s20 = sphi %s2410_s20, %s2949_s20   ;;  %s2309_s19 = sphi %s2408_s19, %s2948_s19   ;;  %s2305_s18 = sphi %s2406_s18, %s2947_s18   ;;  %s2301_s17 = sphi %s2404_s17, %s2946_s17  }
  0x12   : > { %s1856_s24 = sadd.s32 4294967294, %s2321_s22   ;;  %p62_p0 = scmp.ne.s32.totalorder %s2305_s18, %s2301_s17 }
  0x13   : > { %p2438_p1 = scmp.eq.s32.totalorder %s1855_s23, 0  ;;  %p2442_p2 = scmp.eq.s32.totalorder %s1855_s23, 1 }
  0x14   : > { %p304_p3 = scmp.eq.s32.totalorder %s1856_s24, 1  ;;  %p1857_p5 = scmp.ge.s32.totalorder %s2321_s22, 1 }
  0x15   : > { %p2448_p4 = por %p2438_p1, %p62_p0  ;;  %p311_p7 = scmp.lt.s32.totalorder %s2321_s22, 3 }
  0x16   : > { %p2453_p6 = por %p304_p3, %p62_p0  ;;  %s2932_s1 = sld [smem:[#allocation24_spill]] }
  0x17   : > { %p2461_p8 = pnand %p1857_p5, %p311_p7  ;;  %p1863_p9 = scmp.ge.s32.totalorder %s2321_s22, 2 }
  0x18   : > { %s2930_s28 = scalar_select %p2453_p6, 1, 0 }
  0x19   : > { %p1916_p10 = pneg %p2461_p8  ;;  %s2323_s14 = smov [#allocation8]  }
  0x1a   : > { %2931 = sst [smem:[#allocation23_spill]] %s2930_s28  ;;  %s325_s15 = sshll.u32 %s2323_s14, 4  ;;  %s326_s15 = int_to_ptr.vmem [resolvable:$true] %s325_s15 }
  0x1b   : > { %p2470_p11 = pnand %p1916_p10, %p2438_p1  ;;  %s2935_s5 = sld [smem:[#allocation26_spill]] }
  0x1c   : > { %s323_s12 = sshll.u32 %s2932_s1, 4  ;;  %s2324_s30 = smov [#allocation11]   ;;  %s324_s12 = int_to_ptr.hbm [resolvable:$true] %s323_s12 }
  0x1d   : > { %1919 = dma.hbm_to_vmem [thread:$0]  (!%p2470_p11), %s324_s12, 16, %s326_s15, [#allocation9]  }
  0x1e   : > { %s356_s1 = sshll.u32 %s2324_s30, 4  ;;  %s2936_s3 = sld [smem:[#allocation25_spill]]  ;;  %s357_s1 = int_to_ptr.vmem [resolvable:$true] %s356_s1 }
  0x1f   : > { %s2325_s11 = smov 128   ;;  %s2326_s10 = smov 8  }
  0x20   : > { %s2937_s7 = sld [smem:[#allocation27_spill]]  ;;  %s2327_s12 = smov [#allocation10]  }
  0x21   : > { %s354_s29 = sshll.u32 %s2935_s5, 4  ;;  %s339_s15 = sshll.u32 %s2327_s12, 4  ;;  %s355_s29 = int_to_ptr.hbm [resolvable:$true] %s354_s29  ;;  %s340_s15 = int_to_ptr.vmem [resolvable:$true] %s339_s15 }
  0x22   : > { %1925 = dma.hbm_to_vmem [thread:$0]  (!%p2470_p11), %s355_s29, 512, %s357_s1, [#allocation12], %s2325_s11, %s2325_s11, %s2326_s10  }
  0x23   : > { %s2328_s28 = smov [#allocation13]   ;;  %s2938_s9 = sld [smem:[#allocation28_spill]] }
  0x24   : > { %s337_s17 = sshll.u32 %s2936_s3, 4  ;;  %s373_s30 = sshll.u32 %s2328_s28, 4  ;;  %s338_s17 = int_to_ptr.hbm [resolvable:$true] %s337_s17  ;;  %s374_s30 = int_to_ptr.vmem [resolvable:$true] %s373_s30 }
  0x25   : > { %1922 = dma.hbm_to_vmem [thread:$0]  (!%p2470_p11), %s338_s17, 512, %s340_s15, [#allocation9], %s2325_s11, %s2325_s11, %s2326_s10  }
  0x26   : > { %s371_s5 = sshll.u32 %s2937_s7, 4  ;;  %s2329_s23 = smov [#allocation14]   ;;  %s372_s5 = int_to_ptr.hbm [resolvable:$true] %s371_s5 }
  0x27   : > { %1928 = dma.hbm_to_vmem [thread:$0]  (!%p2470_p11), %s372_s5, 512, %s374_s30, [#allocation12], %s2325_s11, %s2325_s11, %s2326_s10  }
  0x28   : > { %s390_s24 = sshll.u32 %s2329_s23, 4  ;;  %s42_s17 = sadd.s32 1, %s2317_s21  ;;  %s391_s24 = int_to_ptr.vmem [resolvable:$true] %s390_s24 }
  0x29   : > { %s388_s29 = sshll.u32 %s2938_s9, 4  ;;  %p44_p12 = scmp.ge.s32.totalorder %s42_s17, 2  ;;  %s389_s29 = int_to_ptr.hbm [resolvable:$true] %s388_s29 }
  0x2a   : > { %1931 = dma.hbm_to_vmem [thread:$0]  (!%p2470_p11), %s389_s29, 512, %s391_s24, [#allocation15], %s2325_s11, %s2325_s11, %s2326_s10  }
  0x2b   : > { %s49_s12 = sadd.s32 1, %s2309_s19  ;;  %p56_p13 = scmp.ne.s32.totalorder %s2309_s19, %s2305_s18 }
  0x2c   : > { %p57_p0 = scmp.eq.s32.totalorder %s2321_s22, 0  ;;  %s2952_s17 = smov (%p44_p12, %s42_s17), 0 }
  0x2d   : > { %p2509_p5 = por %p2442_p2, %p56_p13  ;;  %s46_s16 = ssub.s32 %s2317_s21, %s2952_s17 }
  0x2e   : > { %p2503_p3 = por %p57_p0, %p56_p13  ;;  %p1945_p7 = scmp.lt.s32.totalorder %s2321_s22, 2 }
  0x2f   : > { %p47_p10 = scmp.eq.s32.totalorder %s46_s16, 0  ;;  %s407_s10 = sand.u32 1, %s2309_s19  }
  0x30   : > { %s1864_s11 = sshll.u32 %s407_s10, 3  ;;  %s414_s1 = scalar_lea.hbm %s2904_s0, %s2317_s21 }
  0x31   : > { %s2518_s28 = scalar_select %p47_p10, %s2309_s19, %s49_s12  }
  0x32   : > { %s415_s29 = sshll.u32 %s414_s1, 4  ;;  %s411_s23 = scalar_lea.vmem [#allocation5], %s1864_s11  ;;  %s416_s29 = int_to_ptr.hbm [resolvable:$true] %s415_s29 }
  0x33   : > { %s417_s24 = sshll.u32 %s411_s23, 4  ;;  %p1933_p2 = pnand %p1945_p7, %p2503_p3  ;;  %s418_s24 = int_to_ptr.vmem [resolvable:$true] %s417_s24 }
  0x34   : > { %s408_s26 = scalar_lea.sflag [#allocation6], %s407_s10  ;;  %s2330_s3 = smov 32  }
  0x35   : > { %s2331_s7 = smov 16   ;;  %s2332_s9 = smov 1  }
  0x36   : > { %1935 = dma.hbm_to_vmem [thread:$0]  (!%p1933_p2), %s416_s29, 128, %s418_s24, %s408_s26, %s2330_s3, %s2331_s7, %s2332_s9  }
  0x37   : > { %429 = sbr.rel (%p2461_p8) target bundleno = 1393 (0x571), region = 64  ;;  %s2529_s12 = sand.u32 (!%p2461_p8), 1, %s2305_s18  }
  0x38   : > { %s1866_s16 = sshll.u32 (!%p2461_p8), %s2529_s12, 3  ;;  %s432_s11 = scalar_lea.sflag (!%p2461_p8), [#allocation6], %s2529_s12 }
  0x39   : > { %s435_s15 = scalar_lea.vmem (!%p2461_p8), [#allocation5], %s1866_s16 }
  0x3c   : > { %2280 = dma.done.wait (%p2448_p4), %s432_s11, 128  }
  0x3d   : > { %2282 = vsyncadd (%p2448_p4), %s432_s11, 4294967168 }
  0x3e   : > { %2284 = dma.done.wait (%p2438_p1), [#allocation9], 528  }
  0x3f   : > { %2286 = vsyncadd (%p2438_p1), [#allocation9], 4294966768 }
  0x40   : > { %2288 = dma.done.wait (%p2438_p1), [#allocation12], 1024  }
  0x41   : > { %2290 = vsyncadd (%p2438_p1), [#allocation12], 4294966272 }
  0x42   : > { %2292 = dma.done.wait (%p2438_p1), [#allocation15], 512  }
  0x43   : > { %2294 = vsyncadd (%p2438_p1), [#allocation15], 4294966784  ;;  %v505_v0 = vld [vmem:[%s435_s15] sm:$0x1]  ;;  %v506_v1 = vld [vmem:[%s435_s15 + $0x1] sm:$0x1] }
  0x44   : > { %v507_v2 = vld [vmem:[%s435_s15 + $0x2] sm:$0x1]  ;;  %v508_v3 = vld [vmem:[%s435_s15 + $0x3] sm:$0x1]  ;;  %v509_v4 = vld [vmem:[%s435_s15 + $0x4] sm:$0x1] }
  0x45   : > { %v510_v5 = vld [vmem:[%s435_s15 + $0x5] sm:$0x1]  ;;  %521 = vst [vmem:[#allocation1] ss:$9 sm:$0xff] %v505_v0  ;;  %v511_v6 = vld [vmem:[%s435_s15 + $0x6] sm:$0x1] }
  0x46   : > { %523 = vst [vmem:[#allocation1 + $0x1] ss:$9 sm:$0xff] %v506_v1  ;;  %v512_v7 = vld [vmem:[%s435_s15 + $0x7] sm:$0x1]  ;;  %vm538_vm0 = vcmask 261120   ;;  %v2333_v10 = vmov 32.0  }
  0x47   : > { %525 = vst [vmem:[#allocation1 + $0x2] ss:$9 sm:$0xff] %v507_v2  ;;  %2027 = vrcp.f32 %v2333_v10  ;;  %v2585_v51 = vld [vmem:[#allocation8] ss:$0 sm:$0xff]  ;;  %s2334_s27 = smov 104   ;;  %s2335_s13 = smov 120  }
  0x48   : > { %527 = vst [vmem:[#allocation1 + $0x3] ss:$9 sm:$0xff] %v508_v3  ;;  %v2590_v53 = vld [vmem:[%s2906_s2] ss:$0 sm:$0xff]  ;;  %v652_v55 = vrot.slane %v2585_v51, 1  ;;  %v653_v56 = vrot.slane %v2585_v51, 2 }
  0x49   : > { %529 = vst [vmem:[#allocation1 + $0x4] ss:$9 sm:$0xff] %v509_v4  ;;  %v654_v57 = vrot.slane %v2585_v51, 3  ;;  %v655_v58 = vrot.slane %v2585_v51, 4  ;;  %v656_v60 = vrot.slane %v2585_v51, 5  ;;  %v657_v61 = vrot.slane %v2585_v51, 6 }
  0x4a   : > { %531 = vst [vmem:[#allocation1 + $0x5] ss:$9 sm:$0xff] %v510_v5  ;;  %v658_v62 = vrot.slane %v2585_v51, 7  ;;  %v678_v63 = vrot.slane %v2590_v53, 1  ;;  %s2336_s14 = smov 112   ;;  %vm783_vm5 = vcmask 1047556  }
  0x4b   : > { %533 = vst [vmem:[#allocation1 + $0x6] ss:$9 sm:$0xff] %v511_v6  ;;  %vm893_vm6 = vcmask 64512   ;;  %s2339_s23 = smov 16   ;;  %s2340_s24 = smov 24  }
  0x4c   : > { %535 = vst [vmem:[#allocation1 + $0x7] ss:$9 sm:$0xff] %v512_v7  ;;  %s2341_s26 = smov 8   ;;  %s2941_s3 = sld [smem:[#allocation29_spill]] }
  0x4d   : > { %v2028_v11 = vpop.eup %2027  ;;  %s2942_s25 = sld [smem:[#allocation30_spill]] }
  0x4e   : > { %v543_v12 = vmul.f32 32.0, %v2028_v11  ;;  %vm547_vm1 = vweird.f32 %v2028_v11 }
  0x50   : > { %v544_v13 = vsub.f32 1.0, %v543_v12 }
  0x52   : > { %v545_v14 = vmul.f32 %v2028_v11, %v544_v13 }
  0x53   : > { %v536_v8 = vld [vmem:[#allocation1] sm:$0xff] }
  0x54   : > { %v539_v9 = vsel %vm538_vm0, %v536_v8, 0.0  ;;  %v546_v15 = vadd.f32 %v2028_v11, %v545_v14 }
  0x55   : > { %540 = vadd.xlane.f32.xlu0 %v539_v9 }
  0x56   : > { %v548_v16 = vsel %vm547_vm1, %v2028_v11, %v546_v15  ;;  %v1073_v11 = vld [vmem:[#allocation10 + $0x10] sm:$0xff] }
  0xc8   : > { %v541_v17 = vpop.xlane.xlu0 %540 }
  0xc9   : > { %v549_v18 = vmul.f32 %v548_v16, %v541_v17 }
  0xcb   : > { %v551_v19 = vperm.slane %v549_v18, 0  ;;  %v552_v20 = vperm.slane %v549_v18, 1  ;;  %v553_v21 = vperm.slane %v549_v18, 2  ;;  %v554_v22 = vperm.slane %v549_v18, 3 }
  0xcc   : > { %v555_v23 = vperm.slane %v549_v18, 4  ;;  %v556_v24 = vperm.slane %v549_v18, 5  ;;  %v557_v25 = vperm.slane %v549_v18, 6  ;;  %v558_v26 = vperm.slane %v549_v18, 7 }
  0xcd   : > { %v2552_v27 = vsub.f32 %v505_v0, %v551_v19  ;;  %v2554_v28 = vsub.f32 %v506_v1, %v552_v20  ;;  %v2556_v29 = vsub.f32 %v507_v2, %v553_v21  ;;  %v2558_v30 = vsub.f32 %v508_v3, %v554_v22  ;;  %v1072_v21 = vld [vmem:[#allocation10 + $0x8] sm:$0xff] }
  0xce   : > { %v2560_v31 = vsub.f32 %v509_v4, %v555_v23  ;;  %v2562_v32 = vsub.f32 %v510_v5, %v556_v24  ;;  %v2564_v33 = vsub.f32 %v511_v6, %v557_v25  ;;  %v2572_v37 = vsub.f32 %v512_v7, %v558_v26  ;;  %v729_v4 = vld [vmem:[#allocation11 + $0x18] sm:$0xff]  ;;  %v728_v6 = vld [vmem:[#allocation11 + $0x10] sm:$0xff]  ;;  %v726_v26 = vld [vmem:[#allocation11] sm:$0xff] }
  0xcf   : > { %v575_v34 = vmul.f32 %v2552_v27, %v2552_v27  ;;  %v576_v35 = vmul.f32 %v2554_v28, %v2554_v28  ;;  %v577_v36 = vmul.f32 %v2556_v29, %v2556_v29  ;;  %v578_v38 = vmul.f32 %v2558_v30, %v2558_v30  ;;  %v1074_v5 = vld [vmem:[#allocation10 + $0x18] sm:$0xff]  ;;  %764 = vmatpush.msra.mxu0 %v729_v4 }
  0xd0   : > { %v579_v39 = vmul.f32 %v2560_v31, %v2560_v31  ;;  %v580_v40 = vmul.f32 %v2562_v32, %v2562_v32  ;;  %v581_v41 = vmul.f32 %v2564_v33, %v2564_v33  ;;  %v582_v42 = vmul.f32 %v2572_v37, %v2572_v37  ;;  %1095 = vmatpush.msra.mxu2 %v1074_v5 }
  0xd1   : > { %591 = vst [vmem:[#allocation1] ss:$9 sm:$0xff] %v575_v34  ;;  %v679_v0 = vrot.slane %v2590_v53, 2  ;;  %v680_v1 = vrot.slane %v2590_v53, 3  ;;  %v681_v2 = vrot.slane %v2590_v53, 4  ;;  %765 = vmatpush.msra.mxu0 %v728_v6 }
  0xd2   : > { %593 = vst [vmem:[#allocation1 + $0x1] ss:$9 sm:$0xff] %v576_v35  ;;  %1096 = vmatpush.msra.mxu2 %v1073_v11 }
  0xd3   : > { %595 = vst [vmem:[#allocation1 + $0x2] ss:$9 sm:$0xff] %v577_v36  ;;  %v683_v36 = vrot.slane %v2590_v53, 6 }
  0xd4   : > { %597 = vst [vmem:[#allocation1 + $0x3] ss:$9 sm:$0xff] %v578_v38  ;;  %1097 = vmatpush.msra.mxu2 %v1072_v21 }
  0xd5   : > { %599 = vst [vmem:[#allocation1 + $0x4] ss:$9 sm:$0xff] %v579_v39 }
  0xd6   : > { %601 = vst [vmem:[#allocation1 + $0x5] ss:$9 sm:$0xff] %v580_v40  ;;  %v684_v40 = vrot.slane %v2590_v53, 7 }
  0xd7   : > { %603 = vst [vmem:[#allocation1 + $0x6] ss:$9 sm:$0xff] %v581_v41 }
  0xd8   : > { %605 = vst [vmem:[#allocation1 + $0x7] ss:$9 sm:$0xff] %v582_v42 }
  0xdf   : > { %v606_v43 = vld [vmem:[#allocation1] sm:$0xff] }
  0xe0   : > { %v608_v44 = vsel %vm538_vm0, %v606_v43, 0.0 }
  0xe1   : > { %609 = vadd.xlane.f32.xlu0 %v608_v44 }
 0x154   : > { %v610_v45 = vpop.xlane.xlu0 %609 }
 0x155   : > { %v611_v46 = vmul.f32 %v610_v45, %v548_v16  ;;  %v727_v16 = vld [vmem:[#allocation11 + $0x8] sm:$0xff] }
 0x156   : > { %766 = vmatpush.msra.mxu0 %v727_v16 }
 0x157   : > { %v612_v47 = vadd.f32 1e-05, %v611_v46 }
 0x158   : > { %767 = vmatpush.msra.mxu0 %v726_v26 }
 0x159   : > { %2029 = vrsqrt.f32 %v612_v47  ;;  %vm619_vm3 = vweird.f32 %v612_v47 }
 0x15f   : > { %v2030_v48 = vpop.eup %2029 }
 0x160   : > { %v614_v49 = vmul.f32 %v2030_v48, %v612_v47  ;;  %vm620_vm2 = vweird.f32 %v2030_v48  ;;  %v901_v47 = vld [vmem:[#allocation13 + $0x18] sm:$0xff] }
 0x161   : > { %vm621_vm4 = vmor %vm619_vm3, %vm620_vm2  ;;  %936 = vmatpush.msra.mxu1 %v901_v47 }
 0x162   : > { %v615_v50 = vmul.f32 %v2030_v48, %v614_v49  ;;  %v899_v49 = vld [vmem:[#allocation13 + $0x8] sm:$0xff] }
 0x164   : > { %v616_v52 = vmul.f32 0.5, %v615_v50  ;;  %v898_v50 = vld [vmem:[#allocation13] sm:$0xff] }
 0x166   : > { %v617_v54 = vsub.f32 1.5, %v616_v52 }
 0x168   : > { %v618_v59 = vmul.f32 %v2030_v48, %v617_v54 }
 0x16a   : > { %v622_v3 = vsel %vm621_vm4, %v2030_v48, %v618_v59  ;;  %v900_v48 = vld [vmem:[#allocation13 + $0x10] sm:$0xff] }
 0x16b   : > { %v624_v7 = vperm.slane %v622_v3, 0  ;;  %v625_v8 = vperm.slane %v622_v3, 1  ;;  %v626_v9 = vperm.slane %v622_v3, 2  ;;  %v627_v10 = vperm.slane %v622_v3, 3  ;;  %937 = vmatpush.msra.mxu1 %v900_v48 }
 0x16c   : > { %v628_v12 = vperm.slane %v622_v3, 4  ;;  %v629_v13 = vperm.slane %v622_v3, 5  ;;  %v630_v14 = vperm.slane %v622_v3, 6  ;;  %v631_v15 = vperm.slane %v622_v3, 7 }
 0x16d   : > { %v640_v17 = vmul.f32 %v624_v7, %v2552_v27  ;;  %v641_v18 = vmul.f32 %v625_v8, %v2554_v28  ;;  %v642_v19 = vmul.f32 %v626_v9, %v2556_v29  ;;  %v643_v20 = vmul.f32 %v627_v10, %v2558_v30  ;;  %v1071_v29 = vld [vmem:[#allocation10] sm:$0xff]  ;;  %938 = vmatpush.msra.mxu1 %v899_v49 }
 0x16e   : > { %v644_v22 = vmul.f32 %v628_v12, %v2560_v31  ;;  %v645_v23 = vmul.f32 %v629_v13, %v2562_v32  ;;  %v646_v24 = vmul.f32 %v630_v14, %v2564_v33  ;;  %v647_v25 = vmul.f32 %v631_v15, %v2572_v37  ;;  %1098 = vmatpush.msra.mxu2 %v1071_v29 }
 0x16f   : > { %v666_v27 = vmul.f32 %v2585_v51, %v640_v17  ;;  %v667_v34 = vmul.f32 %v652_v55, %v641_v18  ;;  %v668_v28 = vmul.f32 %v653_v56, %v642_v19  ;;  %v669_v35 = vmul.f32 %v654_v57, %v643_v20  ;;  %939 = vmatpush.msra.mxu1 %v898_v50  ;;  %v2023_v55 = vld [vmem:[%s2910_s6] ss:$0 sm:$0xff] }
 0x170   : > { %v682_v30 = vrot.slane %v2590_v53, 5  ;;  %v670_v31 = vmul.f32 %v655_v58, %v644_v22  ;;  %v671_v38 = vmul.f32 %v656_v60, %v645_v23  ;;  %v672_v32 = vmul.f32 %v657_v61, %v646_v24  ;;  %v2024_v58 = vld [vmem:[%s2908_s4] ss:$0 sm:$0xff] }
 0x171   : > { %v692_v33 = vadd.f32 %v2590_v53, %v666_v27  ;;  %v693_v37 = vadd.f32 %v678_v63, %v667_v34  ;;  %v694_v39 = vadd.f32 %v679_v0, %v668_v28  ;;  %v673_v41 = vmul.f32 %v658_v62, %v647_v25  ;;  %v2025_v61 = vld [vmem:[%s2912_s8] ss:$0 sm:$0xff] }
 0x172   : > { %v695_v42 = vadd.f32 %v680_v1, %v669_v35  ;;  %v696_v43 = vadd.f32 %v681_v2, %v670_v31  ;;  %v697_v44 = vadd.f32 %v682_v30, %v671_v38  ;;  %v698_v45 = vadd.f32 %v683_v36, %v672_v32 }
 0x173   : > { %708 = vst [vmem:[#allocation1] ss:$9 sm:$0xff] %v692_v33  ;;  %v699_v46 = vadd.f32 %v684_v40, %v673_v41  ;;  %v2337_v3 = vmov 1983009808   ;;  %v2338_v12 = vmov 1934713408  }
 0x174   : > { %710 = vst [vmem:[#allocation1 + $0x1] ss:$9 sm:$0xff] %v693_v37  ;;  %v788_v4 = vunpack.c.l.s4 %v2337_v3  ;;  %v812_v13 = vunpack.c.l.s4 %v2338_v12 }
 0x175   : > { %712 = vst [vmem:[#allocation1 + $0x2] ss:$9 sm:$0xff] %v694_v39 }
 0x176   : > { %714 = vst [vmem:[#allocation1 + $0x3] ss:$9 sm:$0xff] %v695_v42  ;;  %v2637_v10 = vunpack.c.0.s8 %v788_v4  ;;  %v2643_v24 = vunpack.c.0.s8 %v812_v13 }
 0x177   : > { %716 = vst [vmem:[#allocation1 + $0x4] ss:$9 sm:$0xff] %v696_v43 }
 0x178   : > { %718 = vst [vmem:[#allocation1 + $0x5] ss:$9 sm:$0xff] %v697_v44 }
 0x179   : > { %720 = vst [vmem:[#allocation1 + $0x6] ss:$9 sm:$0xff] %v698_v45 }
 0x17a   : > { %722 = vst [vmem:[#allocation1 + $0x7] ss:$9 sm:$0xff] %v699_v46 }
 0x181   : > { %v723_v51 = vld [vmem:[#allocation1] sm:$0xff] }
 0x182   : > { %734 = vst [vmem:[#allocation1] ss:$9 sm:$0xff] %v692_v33 }
 0x183   : > { %736 = vst [vmem:[#allocation1 + $0x1] ss:$9 sm:$0xff] %v693_v37 }
 0x184   : > { %738 = vst [vmem:[#allocation1 + $0x2] ss:$9 sm:$0xff] %v694_v39 }
 0x185   : > { %740 = vst [vmem:[#allocation1 + $0x3] ss:$9 sm:$0xff] %v695_v42 }
 0x186   : > { %742 = vst [vmem:[#allocation1 + $0x4] ss:$9 sm:$0xff] %v696_v43 }
 0x187   : > { %744 = vst [vmem:[#allocation1 + $0x5] ss:$9 sm:$0xff] %v697_v44 }
 0x188   : > { %746 = vst [vmem:[#allocation1 + $0x6] ss:$9 sm:$0xff] %v698_v45 }
 0x189   : > { %748 = vst [vmem:[#allocation1 + $0x7] ss:$9 sm:$0xff] %v699_v46 }
 0x18a   : > { %725 = vst.msk [vmem:[#allocation2] sm:$0xff] %vm538_vm0, %v723_v51 }
 0x190   : > { %v749_v52 = vld [vmem:[#allocation1] sm:$0xff] }
 0x191   : > { %1873 = vmatmul.msk.f32.vlgmr.msra.gmra.mxu0 %vm538_vm0, %v749_v52  ;;  %906 = vst [vmem:[#allocation1] ss:$9 sm:$0xff] %v692_v33  ;;  %v1070_v53 = vld [vmem:[#allocation2] sm:$0xff] }
 0x192   : > { %908 = vst [vmem:[#allocation1 + $0x1] ss:$9 sm:$0xff] %v693_v37  ;;  %1875 = vmatmul.msk.f32.vlgmr.msra.gmra.mxu2 %vm538_vm0, %v1070_v53 }
 0x193   : > { %910 = vst [vmem:[#allocation1 + $0x2] ss:$9 sm:$0xff] %v694_v39 }
 0x194   : > { %912 = vst [vmem:[#allocation1 + $0x3] ss:$9 sm:$0xff] %v695_v42 }
 0x195   : > { %914 = vst [vmem:[#allocation1 + $0x4] ss:$9 sm:$0xff] %v696_v43 }
 0x196   : > { %916 = vst [vmem:[#allocation1 + $0x5] ss:$9 sm:$0xff] %v697_v44 }
 0x197   : > { %918 = vst [vmem:[#allocation1 + $0x6] ss:$9 sm:$0xff] %v698_v45 }
 0x198   : > { %920 = vst [vmem:[#allocation1 + $0x7] ss:$9 sm:$0xff] %v699_v46 }
 0x19f   : > { %v921_v54 = vld [vmem:[#allocation1] sm:$0xff] }
 0x1a0   : > { %1874 = vmatmul.msk.f32.vlgmr.msra.gmra.mxu1 %vm538_vm0, %v921_v54 }
 0x20e   : > { %v769_v56 = vpop.f32.mrf.mxu0 }
 0x20f   : > { %v770_v57 = vadd.f32 %v2023_v55, %v769_v56 }
 0x211   : > { %779 = vrot.lane.b32.xlu2 %v770_v57, %s2334_s27  ;;  %773 = vrot.lane.b32.xlu1 %v770_v57, %s2335_s13  ;;  %v785_v18 = vrot.slane %v770_v57, 4 }
 0x215   : > { %v1100_v59 = vpop.f32.mrf.mxu2 }
 0x216   : > { %v1101_v60 = vadd.f32 %v2024_v58, %v1100_v59 }
 0x218   : > { %1107 = vrot.lane.b32.xlu0 %v1101_v60, %s2336_s14  ;;  %v1116_v22 = vrot.slane %v1101_v60, 4 }
 0x219   : > { %776 = vrot.lane.b32.xlu1 %v770_v57, %s2336_s14  ;;  %1104 = vrot.lane.b32.xlu2 %v1101_v60, %s2335_s13 }
 0x21d   : > { %v941_v62 = vpop.f32.mrf.mxu1 }
 0x21e   : > { %v2629_v63 = vadd.f32 %v2025_v61, %v941_v62 }
 0x220   : > { %v956_v52 = vrot.slane %v2629_v63, 4 }
 0x221   : > { %1110 = vrot.lane.b32.xlu1 %v1101_v60, %s2334_s27  ;;  %945 = vrot.lane.b32.xlu2 %v2629_v63, %s2335_s13  ;;  %s499_s13 = scalar_lea.vmem [#allocation16], %s1866_s16 }
 0x222   : > { %s1721_s10 = sshll.u32 %s499_s13, 4  ;;  %s1722_s10 = int_to_ptr.vmem [resolvable:$true] %s1721_s10 }
 0x229   : > { %948 = vrot.lane.b32.xlu1 %v2629_v63, %s2336_s14  ;;  %951 = vrot.lane.b32.xlu2 %v2629_v63, %s2334_s27  ;;  %s1720_s27 = scalar_lea.hbm %s2942_s25, %s2313_s20  ;;  %s1708_s20 = scalar_lea.sflag [#allocation7], %s2529_s12 }
 0x22a   : > { %s2860_s30 = sshll.u32 %s1720_s27, 4  ;;  %s1724_s30 = int_to_ptr.hbm [resolvable:$true] %s2860_s30 }
 0x22b   : > { %s2241_s16 = sshra.s32 %s1724_s30, 4  ;;  %s2242_s16 = int_to_ptr.hbm [resolvable:$true] %s2241_s16 }
 0x22c   : > { %s2243_s14 = scalar_lea.hbm %s2242_s16, 8  ;;  %p2248_p11 = scmp.lt.s32.totalorder %s2242_s16, %s2942_s25 }
 0x22d   : > { %p2244_p1 = scmp.ne.s32.totalorder %s2242_s16, %s2243_s14 }
 0x22f   : > { %p2245_p4 = pnand %p2244_p1, %p2509_p5 }
 0x231   : > { %p2246_p8 = pneg %p2245_p4 }
 0x26b   : > { %v780_v0 = vpop.permute.xlu2 %779 }
 0x26c   : > { %v795_v7 = vrot.slane %v780_v0, 4 }
 0x273   : > { %v2634_v1 = vpop.permute.xlu2 %1104 }
 0x274   : > { %v1128_v48 = vrot.slane %v2634_v1, 4 }
 0x27b   : > { %v946_v2 = vpop.permute.xlu2 %945 }
 0x27c   : > { %v968_v14 = vrot.slane %v946_v2, 4 }
 0x283   : > { %v774_v5 = vpop.permute.xlu1 %773  ;;  %v952_v9 = vpop.permute.xlu2 %951 }
 0x284   : > { %v797_v6 = vrot.slane %v774_v5, 4  ;;  %v796_v11 = vsel %vm783_vm5, %v795_v7, %v774_v5  ;;  %v966_v16 = vrot.slane %v952_v9, 4  ;;  %v969_v20 = vsel %vm783_vm5, %v952_v9, %v968_v14 }
 0x285   : > { %v802_v19 = vperm.slane %v796_v11, %v2637_v10  ;;  %v2650_v29 = vperm.slane %v969_v20, %v2637_v10 }
 0x286   : > { %v798_v8 = vsel %vm783_vm5, %v780_v0, %v797_v6  ;;  %v967_v34 = vsel %vm783_vm5, %v966_v16, %v946_v2 }
 0x287   : > { %v806_v15 = vperm.slane %v798_v8, %v2637_v10  ;;  %v807_v31 = vrot.slane %v802_v19, 4  ;;  %v2657_v37 = vperm.slane %v967_v34, %v2637_v10  ;;  %v990_v49 = vrot.slane %v2650_v29, 4 }
 0x289   : > { %v819_v27 = vrot.slane %v806_v15, 4  ;;  %v978_v53 = vrot.slane %v2657_v37, 4 }
 0x28a   : > { %v1108_v17 = vpop.permute.xlu0 %1107 }
 0x28b   : > { %v1113_v21 = vrot.slane %v1108_v17, 4  ;;  %v777_v23 = vpop.permute.xlu1 %776  ;;  %v1117_v28 = vsel %vm783_vm5, %v1108_v17, %v1116_v22 }
 0x28c   : > { %v782_v25 = vrot.slane %v777_v23, 4  ;;  %v786_v26 = vsel %vm783_vm5, %v777_v23, %v785_v18  ;;  %v1125_v39 = vperm.slane %v1117_v28, %v2637_v10 }
 0x28d   : > { %v794_v35 = vperm.slane %v786_v26, %v2637_v10  ;;  %v1115_v30 = vsel %vm783_vm5, %v1113_v21, %v1101_v60 }
 0x28e   : > { %v784_v36 = vsel %vm783_vm5, %v782_v25, %v770_v57  ;;  %v1121_v41 = vperm.slane %v1115_v30, %v2637_v10  ;;  %v1152_v58 = vrot.slane %v1125_v39, 4 }
 0x28f   : > { %v790_v38 = vperm.slane %v784_v36, %v2637_v10  ;;  %v820_v32 = vsel %vm783_vm5, %v819_v27, %v794_v35  ;;  %v821_v33 = vrot.slane %v794_v35, 4 }
 0x290   : > { %v826_v40 = vperm.slane %v820_v32, %v2643_v24  ;;  %v1140_v57 = vrot.slane %v1121_v41, 4 }
 0x291   : > { %v808_v42 = vsel %vm783_vm5, %v807_v31, %v790_v38  ;;  %v809_v43 = vrot.slane %v790_v38, 4  ;;  %v822_v44 = vsel %vm783_vm5, %v806_v15, %v821_v33 }
 0x292   : > { %v814_v45 = vperm.slane %v808_v42, %v2643_v24  ;;  %v830_v46 = vperm.slane %v822_v44, %v2643_v24  ;;  %v835_v47 = vrot.slane %v826_v40, 4 }
 0x293   : > { %v810_v50 = vsel %vm783_vm5, %v802_v19, %v809_v43  ;;  %v1111_v51 = vpop.permute.xlu1 %1110 }
 0x294   : > { %v818_v54 = vperm.slane %v810_v50, %v2643_v24  ;;  %v831_v55 = vrot.slane %v814_v45, 4  ;;  %v837_v56 = vrot.slane %v830_v46, 4  ;;  %v1126_v59 = vrot.slane %v1111_v51, 4 }
 0x295   : > { %v1129_v60 = vsel %vm783_vm5, %v1111_v51, %v1128_v48  ;;  %v836_v62 = vsel %vm783_vm5, 0.0, %v835_v47 }
 0x296   : > { %v833_v61 = vrot.slane %v818_v54, 4  ;;  %v838_v0 = vsel %vm783_vm5, 0.0, %v837_v56  ;;  %v850_v2 = vsel %vm783_vm5, %v837_v56, %v826_v40  ;;  %v1127_v5 = vsel %vm783_vm5, %v1126_v59, %v2634_v1 }
 0x297   : > { %v854_v3 = vperm.slane %v850_v2, %v2637_v10  ;;  %v855_v4 = vrot.slane %v838_v0, 4  ;;  %v1137_v6 = vperm.slane %v1129_v60, %v2637_v10  ;;  %v832_v7 = vsel %vm783_vm5, 0.0, %v831_v55 }
 0x298   : > { %v834_v8 = vsel %vm783_vm5, 0.0, %v833_v61  ;;  %v839_v9 = vsel %vm783_vm5, %v833_v61, %v814_v45  ;;  %v1133_v11 = vperm.slane %v1127_v5, %v2637_v10 }
 0x299   : > { %v843_v12 = vperm.slane %v839_v9, %v2637_v10  ;;  %v844_v13 = vrot.slane %v834_v8, 4  ;;  %v856_v14 = vsel %vm783_vm5, %v855_v4, %v836_v62  ;;  %v875_v15 = vrot.slane %v854_v3, 4 }
 0x29a   : > { %v860_v16 = vperm.slane %v856_v14, %v2637_v10  ;;  %v1138_v17 = vrot.slane %v1133_v11, 4  ;;  %v1141_v1 = vsel %vm783_vm5, %v1133_v11, %v1140_v57  ;;  %v1150_v18 = vrot.slane %v1137_v6, 4 }
 0x29b   : > { %v845_v19 = vsel %vm783_vm5, %v844_v13, %v832_v7  ;;  %v863_v20 = vrot.slane %v843_v12, 4  ;;  %v1149_v21 = vperm.slane %v1141_v1, %v2643_v24  ;;  %v1153_v22 = vsel %vm783_vm5, %v1137_v6, %v1152_v58  ;;  %v949_v51 = vpop.permute.xlu1 %948 }
 0x29c   : > { %v849_v23 = vperm.slane %v845_v19, %v2637_v10  ;;  %v873_v25 = vrot.slane %v860_v16, 4  ;;  %v876_v26 = vsel %vm783_vm5, %v860_v16, %v875_v15  ;;  %v1139_v27 = vsel %vm783_vm5, %v1138_v17, %v1121_v41 }
 0x29d   : > { %v884_v34 = vperm.slane %v876_v26, %v2643_v24  ;;  %v1145_v28 = vperm.slane %v1139_v27, %v2643_v24  ;;  %v1151_v35 = vsel %vm783_vm5, %v1150_v18, %v1125_v39  ;;  %v1161_v30 = vperm.slane %v1153_v22, %v2643_v24 }
 0x29e   : > { %v861_v36 = vrot.slane %v849_v23, 4  ;;  %v864_v31 = vsel %vm783_vm5, %v849_v23, %v863_v20  ;;  %v874_v38 = vsel %vm783_vm5, %v873_v25, %v854_v3  ;;  %v1157_v32 = vperm.slane %v1151_v35, %v2643_v24 }
 0x29f   : > { %v872_v33 = vperm.slane %v864_v31, %v2643_v24  ;;  %v880_v40 = vperm.slane %v874_v38, %v2643_v24  ;;  %v889_v41 = vrot.slane %v884_v34, 4  ;;  %v1162_v42 = vrot.slane %v1145_v28, 4 }
 0x2a0   : > { %v862_v43 = vsel %vm783_vm5, %v861_v36, %v843_v12  ;;  %v1164_v44 = vrot.slane %v1149_v21, 4  ;;  %v1166_v45 = vrot.slane %v1157_v32, 4  ;;  %v1168_v39 = vrot.slane %v1161_v30, 4 }
 0x2a1   : > { %v868_v46 = vperm.slane %v862_v43, %v2643_v24  ;;  %v885_v47 = vrot.slane %v880_v40, 4  ;;  %v890_v48 = vsel %vm783_vm5, %v889_v41, %v872_v33  ;;  %v891_v50 = vrot.slane %v872_v33, 4 }
 0x2a2   : > { %896 = vst.msk [vmem:[#allocation3 + $0x10] sm:$0xff] %vm893_vm6, %v890_v48  ;;  %v1165_v54 = vsel %vm783_vm5, 0.0, %v1164_v44  ;;  %v1167_v55 = vsel %vm783_vm5, 0.0, %v1166_v45  ;;  %v1169_v56 = vsel %vm783_vm5, 0.0, %v1168_v39  ;;  %v1181_v57 = vsel %vm783_vm5, %v1168_v39, %v1157_v32 }
 0x2a3   : > { %v886_v58 = vsel %vm783_vm5, %v885_v47, %v868_v46  ;;  %v887_v59 = vrot.slane %v868_v46, 4  ;;  %v892_v60 = vsel %vm783_vm5, %v884_v34, %v891_v50  ;;  %v1175_v61 = vrot.slane %v1165_v54, 4 }
 0x2a4   : > { %894 = vst.msk [vmem:[#allocation3] sm:$0xff] %vm893_vm6, %v886_v58  ;;  %v1185_v62 = vperm.slane %v1181_v57, %v2637_v10  ;;  %v1186_v0 = vrot.slane %v1169_v56, 4  ;;  %v954_v2 = vrot.slane %v949_v51, 4  ;;  %v957_v3 = vsel %vm783_vm5, %v949_v51, %v956_v52 }
 0x2a5   : > { %v888_v4 = vsel %vm783_vm5, %v880_v40, %v887_v59  ;;  %897 = vst.msk [vmem:[#allocation3 + $0x18] sm:$0xff] %vm893_vm6, %v892_v60  ;;  %v965_v5 = vperm.slane %v957_v3, %v2637_v10  ;;  %v1163_v6 = vsel %vm783_vm5, 0.0, %v1162_v42  ;;  %v1170_v7 = vsel %vm783_vm5, %v1164_v44, %v1145_v28 }
 0x2a6   : > { %895 = vst.msk [vmem:[#allocation3 + $0x8] sm:$0xff] %vm893_vm6, %v888_v4  ;;  %v1187_v8 = vsel %vm783_vm5, %v1186_v0, %v1167_v55  ;;  %v955_v9 = vsel %vm783_vm5, %v954_v2, %v2629_v63  ;;  %v1174_v11 = vperm.slane %v1170_v7, %v2637_v10  ;;  %v1176_v52 = vsel %vm783_vm5, %v1175_v61, %v1163_v6 }
 0x2a7   : > { %v961_v12 = vperm.slane %v955_v9, %v2637_v10  ;;  %v991_v13 = vsel %vm783_vm5, %v990_v49, %v965_v5  ;;  %v992_v14 = vrot.slane %v965_v5, 4  ;;  %v1180_v15 = vperm.slane %v1176_v52, %v2637_v10 }
 0x2a8   : > { %v997_v16 = vperm.slane %v991_v13, %v2643_v24  ;;  %v1191_v17 = vperm.slane %v1187_v8, %v2637_v10  ;;  %v1194_v1 = vrot.slane %v1174_v11, 4  ;;  %v1206_v18 = vrot.slane %v1185_v62, 4 }
 0x2a9   : > { %v979_v63 = vsel %vm783_vm5, %v978_v53, %v961_v12  ;;  %v980_v19 = vrot.slane %v961_v12, 4  ;;  %v993_v20 = vsel %vm783_vm5, %v2650_v29, %v992_v14  ;;  %v1226_v21 = vld [vmem:[#allocation3 + $0x10] sm:$0xff]  ;;  %v1192_v22 = vrot.slane %v1180_v15, 4 }
 0x2aa   : > { %v985_v49 = vperm.slane %v979_v63, %v2643_v24  ;;  %v1001_v23 = vperm.slane %v993_v20, %v2643_v24  ;;  %v1006_v25 = vrot.slane %v997_v16, 4  ;;  %1880 = vmatpush.xpose.msk.msrb.mxu0 %vm893_vm6, %v1226_v21  ;;  %v1195_v26 = vsel %vm783_vm5, %v1180_v15, %v1194_v1 }
 0x2ab   : > { %v981_v27 = vsel %vm783_vm5, %v2657_v37, %v980_v19  ;;  %v1224_v34 = vld [vmem:[#allocation3] sm:$0xff]  ;;  %v1203_v53 = vperm.slane %v1195_v26, %v2643_v24  ;;  %v1207_v28 = vsel %vm783_vm5, %v1191_v17, %v1206_v18  ;;  %v1193_v29 = vsel %vm783_vm5, %v1192_v22, %v1174_v11 }
 0x2ac   : > { %v989_v35 = vperm.slane %v981_v27, %v2643_v24  ;;  %v1002_v30 = vrot.slane %v985_v49, 4  ;;  %v1008_v36 = vrot.slane %v1001_v23, 4  ;;  %1876 = vmatpush.xpose.msk.msra.mxu3 %vm893_vm6, %v1224_v34  ;;  %v1227_v31 = vld [vmem:[#allocation3 + $0x18] sm:$0xff]  ;;  %v1007_v38 = vsel %vm783_vm5, 0.0, %v1006_v25 }
 0x2ad   : > { %1882 = vmatpush.xpose.msk.msrb.mxu1 %vm893_vm6, %v1227_v31  ;;  %v1215_v37 = vperm.slane %v1207_v28, %v2643_v24  ;;  %v1225_v32 = vld [vmem:[#allocation3 + $0x8] sm:$0xff]  ;;  %v1204_v33 = vrot.slane %v1191_v17, 4  ;;  %v1222_v40 = vrot.slane %v1203_v53, 4  ;;  %v1199_v44 = vperm.slane %v1193_v29, %v2643_v24 }
 0x2ae   : > { %v1004_v41 = vrot.slane %v989_v35, 4  ;;  %v1009_v42 = vsel %vm783_vm5, 0.0, %v1008_v36  ;;  %v1021_v43 = vsel %vm783_vm5, %v1008_v36, %v997_v16  ;;  %v1003_v59 = vsel %vm783_vm5, 0.0, %v1002_v30 }
 0x2af   : > { %v1025_v45 = vperm.slane %v1021_v43, %v2637_v10  ;;  %v1026_v39 = vrot.slane %v1009_v42, 4  ;;  %v1220_v46 = vrot.slane %v1215_v37, 4  ;;  %v1205_v47 = vsel %vm783_vm5, %v1204_v33, %v1185_v62 }
 0x2b0   : > { %1878 = vmatpush.xpose.msk.msrb.mxu3 %vm893_vm6, %v1225_v32  ;;  %v1005_v48 = vsel %vm783_vm5, 0.0, %v1004_v41  ;;  %v1010_v50 = vsel %vm783_vm5, %v1004_v41, %v985_v49  ;;  %v1211_v51 = vperm.slane %v1205_v47, %v2643_v24  ;;  %v1223_v54 = vsel %vm783_vm5, %v1215_v37, %v1222_v40 }
 0x2b1   : > { %v1014_v55 = vperm.slane %v1010_v50, %v2637_v10  ;;  %v1015_v56 = vrot.slane %v1005_v48, 4  ;;  %v1027_v57 = vsel %vm783_vm5, %v1026_v39, %v1007_v38  ;;  %v1046_v58 = vrot.slane %v1025_v45, 4  ;;  %1883 = vmatmul.msk.f32.vlgmr.msrb.gmra.mxu1 %vm893_vm6, %v1223_v54 }
 0x2b2   : > { %v1031_v60 = vperm.slane %v1027_v57, %v2637_v10  ;;  %v1221_v61 = vsel %vm783_vm5, %v1220_v46, %v1203_v53  ;;  %v1216_v62 = vrot.slane %v1211_v51, 4  ;;  %v1218_v15 = vrot.slane %v1199_v44, 4 }
 0x2b3   : > { %v1016_v0 = vsel %vm783_vm5, %v1015_v56, %v1003_v59  ;;  %v1034_v2 = vrot.slane %v1014_v55, 4  ;;  %1881 = vmatmul.msk.f32.vlgmr.msrb.gmra.mxu0 %vm893_vm6, %v1221_v61 }
 0x2b4   : > { %v1020_v3 = vperm.slane %v1016_v0, %v2637_v10  ;;  %v1044_v4 = vrot.slane %v1031_v60, 4  ;;  %v1047_v5 = vsel %vm783_vm5, %v1031_v60, %v1046_v58  ;;  %v1217_v6 = vsel %vm783_vm5, %v1216_v62, %v1199_v44 }
 0x2b5   : > { %v1055_v7 = vperm.slane %v1047_v5, %v2643_v24  ;;  %1877 = vmatmul.msk.f32.vlgmr.msra.gmra.mxu3 %vm893_vm6, %v1217_v6  ;;  %v1219_v21 = vsel %vm783_vm5, %v1211_v51, %v1218_v15 }
 0x2b6   : > { %v1032_v8 = vrot.slane %v1020_v3, 4  ;;  %v1035_v9 = vsel %vm783_vm5, %v1020_v3, %v1034_v2  ;;  %v1045_v11 = vsel %vm783_vm5, %v1044_v4, %v1025_v45 }
 0x2b7   : > { %v1043_v52 = vperm.slane %v1035_v9, %v2643_v24  ;;  %v1051_v12 = vperm.slane %v1045_v11, %v2643_v24  ;;  %v1060_v13 = vrot.slane %v1055_v7, 4 }
 0x2b8   : > { %v1033_v14 = vsel %vm783_vm5, %v1032_v8, %v1014_v55 }
 0x2b9   : > { %v1039_v16 = vperm.slane %v1033_v14, %v2643_v24  ;;  %v1056_v17 = vrot.slane %v1051_v12, 4  ;;  %v1061_v1 = vsel %vm783_vm5, %v1060_v13, %v1043_v52  ;;  %v1062_v18 = vrot.slane %v1043_v52, 4 }
 0x2ba   : > { %1066 = vst.msk [vmem:[#allocation4 + $0x10] sm:$0xff] %vm893_vm6, %v1061_v1 }
 0x2bb   : > { %v1057_v63 = vsel %vm783_vm5, %v1056_v17, %v1039_v16  ;;  %v1058_v19 = vrot.slane %v1039_v16, 4  ;;  %v1063_v20 = vsel %vm783_vm5, %v1055_v7, %v1062_v18 }
 0x2bc   : > { %1064 = vst.msk [vmem:[#allocation4] sm:$0xff] %vm893_vm6, %v1057_v63 }
 0x2bd   : > { %v1059_v22 = vsel %vm783_vm5, %v1051_v12, %v1058_v19  ;;  %1067 = vst.msk [vmem:[#allocation4 + $0x18] sm:$0xff] %vm893_vm6, %v1063_v20  ;;  %1879 = vmatmul.msk.f32.vlgmr.msrb.gmra.mxu3 %vm893_vm6, %v1219_v21 }
 0x2be   : > { %1065 = vst.msk [vmem:[#allocation4 + $0x8] sm:$0xff] %vm893_vm6, %v1059_v22 }
 0x2c1   : > { %v1230_v49 = vld [vmem:[#allocation4 + $0x10] sm:$0xff] }
 0x2c2   : > { %1437 = vmatpush.msra.mxu0 %v1230_v49 }
 0x2c3   : > { %v1228_v23 = vld [vmem:[#allocation4] sm:$0xff] }
 0x2c4   : > { %1391 = vmatpush.msrb.mxu2 %v1228_v23  ;;  %v1231_v25 = vld [vmem:[#allocation4 + $0x18] sm:$0xff] }
 0x2c5   : > { %1460 = vmatpush.msra.mxu1 %v1231_v25  ;;  %v1229_v26 = vld [vmem:[#allocation4 + $0x8] sm:$0xff] }
 0x2c6   : > { %1414 = vmatpush.msra.mxu3 %v1229_v26 }
 0x32e   : > { %v1334_v30 = vpop.f32.mrf.mxu1 }
 0x32f   : > { %v1346_v36 = vsel %vm893_vm6, %v1334_v30, -inf }
 0x330   : > { %v1308_v27 = vpop.f32.mrf.mxu0 }
 0x331   : > { %v1343_v34 = vsel %vm893_vm6, %v1308_v27, -inf }
 0x332   : > { %1344 = vmax.xlane.f32.xlu0 %v1343_v34 }
 0x338   : > { %v1256_v53 = vpop.f32.mrf.mxu3 }
 0x339   : > { %v1337_v28 = vsel %vm893_vm6, %v1256_v53, -inf }
 0x33a   : > { %1338 = vmax.xlane.f32.xlu1 %v1337_v28 }
 0x340   : > { %v1282_v29 = vpop.f32.mrf.mxu3 }
 0x341   : > { %v1340_v35 = vsel %vm893_vm6, %v1282_v29, -inf }
 0x342   : > { %1341 = vmax.xlane.f32.xlu2 %v1340_v35 }
 0x34a   : > { %1347 = vmax.xlane.f32.xlu2 %v1346_v36 }
 0x3a5   : > { %v1345_v31 = vpop.xlane.xlu0 %1344 }
 0x3a6   : > { %v1351_v38 = vsub.f32 %v1308_v27, %v1345_v31 }
 0x3a8   : > { %v1357_v37 = vmul.f32 1.442695, %v1351_v38 }
 0x3aa   : > { %2031 = vpow2.f32 %v1357_v37 }
 0x3ad   : > { %v1339_v32 = vpop.xlane.xlu1 %1338 }
 0x3ae   : > { %v1349_v33 = vsub.f32 %v1256_v53, %v1339_v32 }
 0x3b0   : > { %v2032_v40 = vpop.eup %2031  ;;  %v1353_v41 = vmul.f32 1.442695, %v1349_v33 }
 0x3b1   : > { %1886 = vmatmul.msk.f32.vlgmr.msra.gmra.mxu0 %vm893_vm6, %v2032_v40  ;;  %v1367_v42 = vsel %vm893_vm6, %v2032_v40, 0.0 }
 0x3b2   : > { %2033 = vpow2.f32 %v1353_v41  ;;  %1368 = vadd.xlane.f32.xlu1 %v1367_v42 }
 0x3b5   : > { %v1342_v43 = vpop.xlane.xlu2 %1341 }
 0x3b6   : > { %v1350_v44 = vsub.f32 %v1282_v29, %v1342_v43 }
 0x3b8   : > { %v2034_v45 = vpop.eup %2033  ;;  %v1355_v39 = vmul.f32 1.442695, %v1350_v44 }
 0x3b9   : > { %1884 = vmatmul.msk.f32.vlgmr.msrb.gmra.mxu2 %vm893_vm6, %v2034_v45  ;;  %v1361_v46 = vsel %vm893_vm6, %v2034_v45, 0.0 }
 0x3ba   : > { %2035 = vpow2.f32 %v1355_v39  ;;  %1362 = vadd.xlane.f32.xlu0 %v1361_v46 }
 0x3bd   : > { %v1348_v47 = vpop.xlane.xlu2 %1347 }
 0x3be   : > { %v1352_v48 = vsub.f32 %v1334_v30, %v1348_v47 }
 0x3c0   : > { %v2036_v50 = vpop.eup %2035  ;;  %v1359_v51 = vmul.f32 1.442695, %v1352_v48 }
 0x3c1   : > { %1885 = vmatmul.msk.f32.vlgmr.msra.gmra.mxu3 %vm893_vm6, %v2036_v50  ;;  %v1364_v54 = vsel %vm893_vm6, %v2036_v50, 0.0 }
 0x3c2   : > { %2037 = vpow2.f32 %v1359_v51  ;;  %1365 = vadd.xlane.f32.xlu1 %v1364_v54 }
 0x3c8   : > { %v2038_v55 = vpop.eup %2037 }
 0x3c9   : > { %1887 = vmatmul.msk.f32.vlgmr.msra.gmra.mxu1 %vm893_vm6, %v2038_v55  ;;  %v1370_v56 = vsel %vm893_vm6, %v2038_v55, 0.0 }
 0x3ca   : > { %1371 = vadd.xlane.f32.xlu2 %v1370_v56 }
 0x425   : > { %v1369_v57 = vpop.xlane.xlu1 %1368 }
 0x426   : > { %2039 = vrcp.f32 %v1369_v57  ;;  %v1506_v52 = vand.u32 2147483648, %v1369_v57  ;;  %vm1500_vm11 = vweird.f32 %v1369_v57  ;;  %v1504_v12 = vand.u32 2147483647, %v1369_v57 }
 0x428   : > { %v1507_v18 = vor.u32 1.1754944e-38, %v1506_v52  ;;  %vm1505_vm14 = vcmp.eq.f32.partialorder %v1504_v12, 8.507059e+37 }
 0x42c   : > { %v2040_v58 = vpop.eup %2039 }
 0x42d   : > { %v1363_v59 = vpop.xlane.xlu0 %1362  ;;  %v1496_v60 = vmul.f32 %v2040_v58, %v1369_v57  ;;  %vm1501_vm8 = vweird.f32 %v2040_v58 }
 0x42e   : > { %2041 = vrcp.f32 %v1363_v59  ;;  %v1476_v6 = vand.u32 2147483648, %v1363_v59  ;;  %vm1470_vm9 = vweird.f32 %v1363_v59  ;;  %v1474_v9 = vand.u32 2147483647, %v1363_v59  ;;  %vm1502_vm12 = vmor %vm1500_vm11, %vm1501_vm8  ;;  %v1439_v27 = vpop.f32.mrf.mxu0 }
 0x42f   : > { %v1497_v61 = vsub.f32 1.0, %v1496_v60  ;;  %vm1650_vm11 = vcmask 195584  }
 0x430   : > { %v1477_v16 = vor.u32 1.1754944e-38, %v1476_v6  ;;  %vm1475_vm13 = vcmp.eq.f32.partialorder %v1474_v9, 8.507059e+37 }
 0x431   : > { %v1498_v4 = vmul.f32 %v2040_v58, %v1497_v61 }
 0x433   : > { %v1499_v7 = vadd.f32 %v2040_v58, %v1498_v4 }
 0x434   : > { %v2042_v62 = vpop.eup %2041 }
 0x435   : > { %v1466_v0 = vmul.f32 %v2042_v62, %v1363_v59  ;;  %v1366_v2 = vpop.xlane.xlu1 %1365  ;;  %vm1471_vm7 = vweird.f32 %v2042_v62  ;;  %v1503_v17 = vsel %vm1502_vm12, %v2040_v58, %v1499_v7 }
 0x436   : > { %2043 = vrcp.f32 %v1366_v2  ;;  %vm1472_vm10 = vmor %vm1470_vm9, %vm1471_vm7  ;;  %v1508_v20 = vsel %vm1505_vm14, %v1507_v18, %v1503_v17  ;;  %v1491_v22 = vand.u32 2147483648, %v1366_v2  ;;  %vm1485_vm1 = vweird.f32 %v1366_v2 }
 0x437   : > { %v1467_v3 = vsub.f32 1.0, %v1466_v0  ;;  %v1489_v25 = vand.u32 2147483647, %v1366_v2  ;;  %v1509_v28 = vmul.f32 %v1508_v20, %v1439_v27 }
 0x438   : > { %v1492_v29 = vor.u32 1.1754944e-38, %v1491_v22 }
 0x439   : > { %v1468_v5 = vmul.f32 %v2042_v62, %v1467_v3  ;;  %vm1490_vm3 = vcmp.eq.f32.partialorder %v1489_v25, 8.507059e+37  ;;  %v1525_v32 = vrot.slane %v1509_v28, 4 }
 0x43b   : > { %v1469_v8 = vadd.f32 %v2042_v62, %v1468_v5 }
 0x43c   : > { %v2044_v11 = vpop.eup %2043  ;;  %v1393_v21 = vpop.f32.mrf.mxu2 }
 0x43d   : > { %v1481_v13 = vmul.f32 %v2044_v11, %v1366_v2  ;;  %v1473_v14 = vsel %vm1472_vm10, %v2042_v62, %v1469_v8  ;;  %v1372_v15 = vpop.xlane.xlu2 %1371  ;;  %vm1486_vm15 = vweird.f32 %v2044_v11  ;;  %vm1648_vm10 = vcmask 130048  }
 0x43e   : > { %2045 = vrcp.f32 %v1372_v15  ;;  %v1478_v63 = vsel %vm1475_vm13, %v1477_v16, %v1473_v14  ;;  %vm1487_vm2 = vmor %vm1485_vm1, %vm1486_vm15  ;;  %v1521_v31 = vand.u32 2147483648, %v1372_v15  ;;  %v1519_v37 = vand.u32 2147483647, %v1372_v15 }
 0x43f   : > { %v1482_v1 = vsub.f32 1.0, %v1481_v13  ;;  %v1479_v49 = vmul.f32 %v1478_v63, %v1393_v21  ;;  %vm1515_vm7 = vweird.f32 %v1372_v15 }
 0x440   : > { %v1522_v43 = vor.u32 1.1754944e-38, %v1521_v31  ;;  %vm1520_vm9 = vcmp.eq.f32.partialorder %v1519_v37, 8.507059e+37 }
 0x441   : > { %v1483_v19 = vmul.f32 %v2044_v11, %v1482_v1  ;;  %v1527_v35 = vrot.slane %v1479_v49, 4  ;;  %v1526_v44 = vsel %vm783_vm5, %v1525_v32, %v1479_v49 }
 0x442   : > { %v1532_v51 = vperm.slane %v1526_v44, %v2637_v10  ;;  %v1655_v44 = vld [vmem:[#allocation14 + $0x18] sm:$0xff] }
 0x443   : > { %v1484_v23 = vadd.f32 %v2044_v11, %v1483_v19  ;;  %v1528_v40 = vsel %vm783_vm5, %v1509_v28, %v1527_v35  ;;  %1675 = vmatpush.msra.mxu2 %v1655_v44 }
 0x444   : > { %v2046_v26 = vpop.eup %2045  ;;  %v1416_v33 = vpop.f32.mrf.mxu3  ;;  %v1536_v39 = vperm.slane %v1528_v40, %v2637_v10  ;;  %v1551_v59 = vrot.slane %v1532_v51, 4 }
 0x445   : > { %v1511_v34 = vmul.f32 %v2046_v26, %v1372_v15  ;;  %v1488_v53 = vsel %vm1487_vm2, %v2044_v11, %v1484_v23  ;;  %vm1516_vm4 = vweird.f32 %v2046_v26 }
 0x446   : > { %v1493_v36 = vsel %vm1490_vm3, %v1492_v29, %v1488_v53  ;;  %vm1517_vm8 = vmor %vm1515_vm7, %vm1516_vm4  ;;  %v1462_v46 = vpop.f32.mrf.mxu1  ;;  %v1563_v56 = vrot.slane %v1536_v39, 4 }
 0x447   : > { %v1512_v30 = vsub.f32 1.0, %v1511_v34  ;;  %v1494_v41 = vmul.f32 %v1493_v36, %v1416_v33 }
 0x449   : > { %v1513_v38 = vmul.f32 %v2046_v26, %v1512_v30  ;;  %v1539_v48 = vrot.slane %v1494_v41, 4 }
 0x44b   : > { %v1514_v42 = vadd.f32 %v2046_v26, %v1513_v38 }
 0x44d   : > { %v1518_v45 = vsel %vm1517_vm8, %v2046_v26, %v1514_v42 }
 0x44e   : > { %v1523_v47 = vsel %vm1520_vm9, %v1522_v43, %v1518_v45  ;;  %v1654_v45 = vld [vmem:[#allocation14 + $0x10] sm:$0xff] }
 0x44f   : > { %v1524_v50 = vmul.f32 %v1523_v47, %v1462_v46  ;;  %1676 = vmatpush.msra.mxu2 %v1654_v45 }
 0x451   : > { %v1537_v54 = vrot.slane %v1524_v50, 4  ;;  %v1540_v55 = vsel %vm783_vm5, %v1524_v50, %v1539_v48 }
 0x452   : > { %v1548_v57 = vperm.slane %v1540_v55, %v2637_v10  ;;  %v2026_v55 = vld [vmem:[%s2941_s3] ss:$0 sm:$0xff] }
 0x453   : > { %v1538_v58 = vsel %vm783_vm5, %v1537_v54, %v1494_v41 }
 0x454   : > { %v1544_v60 = vperm.slane %v1538_v58, %v2637_v10  ;;  %v1561_v61 = vrot.slane %v1548_v57, 4  ;;  %v1564_v62 = vsel %vm783_vm5, %v1548_v57, %v1563_v56 }
 0x455   : > { %v1572_v0 = vperm.slane %v1564_v62, %v2643_v24 }
 0x456   : > { %v1549_v2 = vrot.slane %v1544_v60, 4  ;;  %v1552_v3 = vsel %vm783_vm5, %v1544_v60, %v1551_v59  ;;  %v1562_v4 = vsel %vm783_vm5, %v1561_v61, %v1536_v39  ;;  %v1652_v39 = vld [vmem:[#allocation14] sm:$0xff] }
 0x457   : > { %v1560_v5 = vperm.slane %v1552_v3, %v2643_v24  ;;  %v1568_v6 = vperm.slane %v1562_v4, %v2643_v24  ;;  %v1579_v7 = vrot.slane %v1572_v0, 4 }
 0x458   : > { %v1550_v8 = vsel %vm783_vm5, %v1549_v2, %v1532_v51 }
 0x459   : > { %v1556_v9 = vperm.slane %v1550_v8, %v2643_v24  ;;  %v1575_v11 = vrot.slane %v1560_v5, 4  ;;  %v1577_v52 = vrot.slane %v1568_v6, 4  ;;  %v1580_v12 = vsel %vm783_vm5, 0.0, %v1579_v7 }
 0x45a   : > { %v1592_v13 = vsel %vm783_vm5, %v1579_v7, %v1568_v6  ;;  %v1597_v14 = vrot.slane %v1580_v12, 4 }
 0x45b   : > { %v1576_v15 = vsel %vm783_vm5, 0.0, %v1575_v11  ;;  %v1573_v16 = vrot.slane %v1556_v9, 4  ;;  %v1578_v17 = vsel %vm783_vm5, 0.0, %v1577_v52  ;;  %v1581_v1 = vsel %vm783_vm5, %v1575_v11, %v1556_v9 }
 0x45c   : > { %v1586_v18 = vrot.slane %v1576_v15, 4  ;;  %v1585_v63 = vperm.slane %v1581_v1, %v2637_v10  ;;  %v1596_v19 = vperm.slane %v1592_v13, %v2637_v10  ;;  %v1598_v20 = vsel %vm783_vm5, %v1597_v14, %v1578_v17 }
 0x45d   : > { %v1574_v21 = vsel %vm783_vm5, 0.0, %v1573_v16  ;;  %v1602_v22 = vperm.slane %v1598_v20, %v2637_v10 }
 0x45e   : > { %v1587_v49 = vsel %vm783_vm5, %v1586_v18, %v1574_v21  ;;  %v1605_v23 = vrot.slane %v1585_v63, 4  ;;  %v1617_v25 = vrot.slane %v1596_v19, 4 }
 0x45f   : > { %v1591_v26 = vperm.slane %v1587_v49, %v2637_v10  ;;  %v1615_v27 = vrot.slane %v1602_v22, 4 }
 0x460   : > { %v1618_v34 = vsel %vm783_vm5, %v1602_v22, %v1617_v25 }
 0x461   : > { %v1606_v53 = vsel %vm783_vm5, %v1591_v26, %v1605_v23  ;;  %v1626_v28 = vperm.slane %v1618_v34, %v2643_v24  ;;  %v1603_v29 = vrot.slane %v1591_v26, 4  ;;  %v1616_v35 = vsel %vm783_vm5, %v1615_v27, %v1596_v19 }
 0x462   : > { %v1614_v30 = vperm.slane %v1606_v53, %v2643_v24  ;;  %v1622_v36 = vperm.slane %v1616_v35, %v2643_v24 }
 0x463   : > { %v1631_v31 = vrot.slane %v1626_v28, 4  ;;  %v1604_v38 = vsel %vm783_vm5, %v1603_v29, %v1585_v63 }
 0x464   : > { %v1633_v37 = vrot.slane %v1614_v30, 4  ;;  %v1610_v10 = vperm.slane %v1604_v38, %v2643_v24  ;;  %v1627_v32 = vrot.slane %v1622_v36, 4  ;;  %v1653_v24 = vld [vmem:[#allocation14 + $0x8] sm:$0xff] }
 0x465   : > { %v1632_v33 = vsel %vm783_vm5, %v1631_v31, %v1614_v30  ;;  %1677 = vmatpush.msra.mxu2 %v1653_v24 }
 0x466   : > { %1640 = vrot.lane.b32.xlu2 %v1632_v33, %s2339_s23  ;;  %v1634_v40 = vsel %vm783_vm5, %v1626_v28, %v1633_v37  ;;  %v1629_v41 = vrot.slane %v1610_v10, 4  ;;  %v1628_v42 = vsel %vm783_vm5, %v1627_v32, %v1610_v10 }
 0x467   : > { %1644 = vrot.lane.b32.xlu1 %v1634_v40, %s2340_s24  ;;  %1678 = vmatpush.msra.mxu2 %v1652_v39  ;;  %s2247_s24 = scalar_lea.hbm %s2942_s25, 16 }
 0x468   : > { %v1630_v43 = vsel %vm783_vm5, %v1622_v36, %v1629_v41  ;;  %vm1698_vm5 = vcmask 253952   ;;  %p2249_p12 = scmp.lt.s32.totalorder %s2247_s24, %s2243_s14 }
 0x469   : > { %1636 = vrot.lane.b32.xlu0 %v1630_v43, %s2341_s26 }
 0x46a   : > { %p2250_p13 = por %p2249_p12, %p2248_p11 }
 0x46c   : > { %p2251_p0 = pnand %p2250_p13, %p2246_p8 }
 0x4c0   : > { %v1641_v47 = vpop.permute.xlu2 %1640 }
 0x4d9   : > { %v1645_v50 = vpop.permute.xlu1 %1644 }
 0x4db   : > { %v1637_v46 = vpop.permute.xlu0 %1636 }
 0x4dc   : > { %v1647_v48 = vsel %vm893_vm6, %v1628_v42, %v1637_v46 }
 0x4dd   : > { %v1649_v51 = vsel %vm1648_vm10, %v1647_v48, %v1641_v47 }
 0x4de   : > { %v1651_v54 = vsel %vm1650_vm11, %v1649_v51, %v1645_v50 }
 0x4df   : > { %1888 = vmatmul.msk.f32.vlgmr.msra.gmra.mxu2 %vm538_vm0, %v1651_v54 }
 0x562   : > { %v1680_v56 = vpop.f32.mrf.mxu2 }
 0x563   : > { %v1681_v57 = vadd.f32 %v2026_v55, %v1680_v56 }
 0x565   : > { %v1684_v58 = vrot.slane %v1681_v57, 1  ;;  %v1685_v59 = vrot.slane %v1681_v57, 2  ;;  %v1686_v60 = vrot.slane %v1681_v57, 3  ;;  %1699 = vst.msk [vmem:[%s499_s13] sm:$0x1] %vm1698_vm5, %v1681_v57  ;;  %v1687_v61 = vrot.slane %v1681_v57, 4 }
 0x566   : > { %v1688_v62 = vrot.slane %v1681_v57, 5  ;;  %v1689_v0 = vrot.slane %v1681_v57, 6  ;;  %v1690_v2 = vrot.slane %v1681_v57, 7 }
 0x567   : > { %1700 = vst.msk [vmem:[%s499_s13 + $0x1] sm:$0x1] %vm1698_vm5, %v1684_v58 }
 0x568   : > { %1701 = vst.msk [vmem:[%s499_s13 + $0x2] sm:$0x1] %vm1698_vm5, %v1685_v59 }
 0x569   : > { %1702 = vst.msk [vmem:[%s499_s13 + $0x3] sm:$0x1] %vm1698_vm5, %v1686_v60 }
 0x56a   : > { %1703 = vst.msk [vmem:[%s499_s13 + $0x4] sm:$0x1] %vm1698_vm5, %v1687_v61 }
 0x56b   : > { %1704 = vst.msk [vmem:[%s499_s13 + $0x5] sm:$0x1] %vm1698_vm5, %v1688_v62 }
 0x56c   : > { %1705 = vst.msk [vmem:[%s499_s13 + $0x6] sm:$0x1] %vm1698_vm5, %v1689_v0 }
 0x56d   : > { %1706 = vst.msk [vmem:[%s499_s13 + $0x7] sm:$0x1] %vm1698_vm5, %v1690_v2 }
 0x56e   : > { %2254 = shalt.err (!%p2251_p0)
}
 0x56f   : > { %s2342_s12 = smov 32   ;;  %s2343_s15 = smov 1  }
 0x570   : > { %1914 = dma.vmem_to_hbm [thread:$0]  (%p2509_p5), %s1722_s10, 128, %s1724_s30, %s1708_s20, %s2339_s23, %s2342_s12, %s2343_s15  }
 0x571 PF: > { %s2943_s3 = sld [smem:[#allocation22_spill]]  ;;  %p1937_p3 = pnand %p1863_p9, %p2453_p6 }
 0x573   : > { %p1938_p7 = pneg %p1937_p3 }
 0x577   : > { %s1738_s9 = sand.u32 1, %s2943_s3  }
 0x578   : > { %s1739_s27 = scalar_lea.sflag [#allocation7], %s1738_s9 }
 0x579   : > { %2296 = dma.done.wait (%p1938_p7), %s1739_s27, 128  }
 0x57a   : > { %2298 = vsyncadd (%p1938_p7), %s1739_s27, 4294967168  ;;  %s30_s22 = sadd.s32 1, %s2321_s22   ;;  %s2945_s5 = smov %s2952_s17 }
 0x57b   : > { %p27_p10 = scmp.ge.s32.totalorder %s30_s22, 4   ;;  %s2946_s17 = smov %s2305_s18 }
 0x57c   : > { %s2947_s18 = smov %s2309_s19  ;;  %s2948_s19 = smov %s2518_s28 }
 0x57d   : > { %s2949_s20 = smov %s2317_s21  ;;  %s2950_s21 = smov %s2945_s5 }
 0x57e   :  { %29 = sbr.rel (!%p27_p10) target bundleno = 17 (0x11), region = 169 }
 0x583   :  { %1745 = vsyncpa [#allocation6], 1 }
 0x584   :  { %1747 = vsyncpa [#allocation6 + $0x1], 1 }
 0x585   :  { %1748 = vsyncpa [#allocation9], 1 }
 0x586   :  { %1749 = vsyncpa [#allocation12], 1 }
 0x587   :  { %1750 = vsyncpa [#allocation15], 1 }
 0x588   :  { %1751 = vsyncpa [#allocation7], 1 }
 0x589   :  { %1753 = vsyncpa [#allocation7 + $0x1], 1 }

</bundles_post_ra>
